<compile_context>
chip_gen: v7x
topology: tpu7x:2x2x1
jax: 0.10.0
libtpu: 0.0.40
codegen_flags: <defaults>
</compile_context>

<pallas_src>
import functools
import math

import jax
import jax.numpy as jnp
from jax import lax
from jax.experimental import pallas as pl
from jax.experimental.pallas import tpu as pltpu


# ----------------------------------------------------------------------------
# Chip-aware VMEM planning.
# ----------------------------------------------------------------------------
def _vmem_plan():
    """Returns (vmem_limit_bytes, max_fused_x_block_bytes)."""
    phys = 64 << 20  # conservative default = v7x per-TensorCore VMEM
    try:
        phys = int(pltpu.get_tpu_info().vmem_capacity_bytes)
    except Exception:
        pass
    if phys >= (128 << 20):            # v5e / v6e: plenty of VMEM, fuse big slabs
        return 100 << 20, 20 << 20
    # v7x (64 MiB physical): 6 MiB x-blocks -> ~24 MiB with in+out double-buffered.
    return 32 << 20, 6 << 20


def _pick_batch_block(batch, slab_bytes, cap_bytes):
    """Largest divisor of `batch` whose fused block fits the VMEM budget, keeping
    >= 2 grid steps (megacore / 2-TC sharding) whenever batch > 1."""
    best = 1
    for bb in range(1, batch + 1):
        if batch % bb:
            continue
        if bb * slab_bytes > cap_bytes:
            break
        if batch > 1 and (batch // bb) < 2:
            break
        best = bb
    return best


def _pick_block_hw(hw, c, itemsize, target_bytes=4 << 20):
    """Lane-dense HW tile (multiple of 128, ~target_bytes) for the streamed path."""
    lanes_cap = max(128, ((target_bytes // max(1, c * itemsize)) // 128) * 128)
    if hw <= lanes_cap:
        return hw                       # full extent: always a legal block shape
    best_div = 0
    b = 128
    while b <= lanes_cap:
        if hw % b == 0:
            best_div = b
        b += 128
    return best_div if best_div else lanes_cap   # no divisor -> masked tail tile


# ---------------- Fused path: pool + MLP + scale on a resident slab ----------------
def _fused_se_kernel(x_ref, w1_ref, b1_ref, w2_ref, b2_ref, out_ref, *, inv_hw):
    xb = x_ref[...]                                               # (Bb, C, HW) in VMEM
    pooled = jnp.sum(xb.astype(jnp.float32), axis=-1) * inv_hw    # (Bb, C)
    h = jnp.dot(pooled, w1_ref[...], preferred_element_type=jnp.float32) + b1_ref[...]
    h = jnp.maximum(h, 0.0)
    gate = jnp.tanh(jnp.dot(h, w2_ref[...], preferred_element_type=jnp.float32)
                    + b2_ref[...])                                # (Bb, C)
    out_ref[...] = (xb * gate[:, :, None].astype(xb.dtype)).astype(out_ref.dtype)


# ------- Two-pass path, pass 1: streamed partial spatial sums (VPU-only hot loop) -------
def _pool_kernel(x_ref, psum_ref, *, block_hw, n_inner, hw, needs_mask, p):
    i = pl.program_id(2)

    @pl.when(i == 0)
    def _():
        psum_ref[...] = jnp.zeros_like(psum_ref)

    xb = x_ref[...].astype(jnp.float32)                           # (1, C, block_hw)
    if needs_mask:  # the last HW tile may hang past HW: zero the padding lanes
        start = (pl.program_id(1) * n_inner + i) * block_hw
        pos = start + lax.broadcasted_iota(jnp.int32, xb.shape, 2)
        xb = jnp.where(pos < hw, xb, 0.0)

    if p == 128:
        # Pure VPU: add 128-lane chunks into a (1, C, 128) lane-partial accumulator.
        # The single cross-lane reduce happens once per batch, outside the kernel.
        s = xb[:, :, 0:128]
        for j in range(1, block_hw // 128):
            s = s + xb[:, :, j * 128:(j + 1) * 128]
        psum_ref[...] += s[:, None, :, :]
    else:           # rare fallback: HW itself is a single sub-128-lane tile
        psum_ref[...] += jnp.sum(xb, axis=-1)[:, None, :, None]


# ------- Two-pass path, pass 2: streamed out = x * gate (lane-replicated gate) -------
def _scale_kernel(x_ref, gate_ref, out_ref, *, block_hw):
    g = gate_ref[...]                                             # (1, C, 128) replicated
    if block_hw % 128 == 0:
        for j in range(block_hw // 128):
            sl = slice(j * 128, (j + 1) * 128)
            out_ref[:, :, sl] = (x_ref[:, :, sl] * g).astype(out_ref.dtype)
    else:           # full-extent sub-128-lane tile fallback
        out_ref[...] = (x_ref[...] * gate_ref[:, :, :1]).astype(out_ref.dtype)


def _se_two_pass(x, w1, b1, w2, b2, block_hw, vmem_limit):
    B, C, HW = x.shape
    itemsize = jnp.dtype(x.dtype).itemsize
    n_blocks = int(pl.cdiv(HW, block_hw))
    needs_mask = (n_blocks * block_hw != HW)
    # Split HW into two *parallel* chunks so both v7x TensorCores stream even at B == 1;
    # the per-chunk partial sums are combined explicitly below (keeps this correct).
    n_outer = 2 if (n_blocks >= 2 and n_blocks % 2 == 0) else 1
    n_inner = n_blocks // n_outer
    p = 128 if block_hw % 128 == 0 else 1

    psum = pl.pallas_call(
        functools.partial(_pool_kernel, block_hw=block_hw, n_inner=n_inner, hw=HW,
                          needs_mask=needs_mask, p=p),
        out_shape=jax.ShapeDtypeStruct((B, n_outer, C, p), jnp.float32),
        grid=(B, n_outer, n_inner),
        in_specs=[pl.BlockSpec((1, C, block_hw),
                               lambda b, o, i: (b, 0, o * n_inner + i))],
        out_specs=pl.BlockSpec((1, 1, C, p), lambda b, o, i: (b, o, 0, 0)),
        compiler_params=pltpu.CompilerParams(
            dimension_semantics=("parallel", "parallel", "arbitrary"),
            vmem_limit_bytes=vmem_limit),
        cost_estimate=pl.CostEstimate(
            flops=B * C * HW, transcendentals=0,
            bytes_accessed=B * C * HW * itemsize + B * n_outer * C * p * 4),
    )(x)

    # Tiny per-batch MLP in plain JAX (off the streamed path; combines the HW halves).
    pooled = jnp.sum(psum, axis=(1, 3)) * (1.0 / HW)              # (B, C) f32
    h = jnp.maximum(pooled @ w1 + b1, 0.0)
    gate = jnp.tanh(h @ w2 + b2)                                  # (B, C)
    gate_rep = jnp.broadcast_to(gate.astype(x.dtype)[:, :, None], (B, C, 128))

    return pl.pallas_call(
        functools.partial(_scale_kernel, block_hw=block_hw),
        out_shape=jax.ShapeDtypeStruct((B, C, HW), x.dtype),
        grid=(B, n_blocks),
        in_specs=[pl.BlockSpec((1, C, block_hw), lambda b, i: (b, 0, i)),
                  pl.BlockSpec((1, C, 128), lambda b, i: (b, 0, 0))],
        out_specs=pl.BlockSpec((1, C, block_hw), lambda b, i: (b, 0, i)),
        compiler_params=pltpu.CompilerParams(
            dimension_semantics=("parallel", "parallel"),
            vmem_limit_bytes=vmem_limit),
        cost_estimate=pl.CostEstimate(
            flops=B * C * HW, transcendentals=0,
            bytes_accessed=2 * B * C * HW * itemsize + B * C * 128 * itemsize),
    )(x, gate_rep)


def se_block(x_nchw, w1, b1, w2, b2, *, block_hw=None, fused_cap_bytes=None):
    """SEBlock forward. x: (B, C, H, W). w1: (C, Cr), b1: (1, Cr), w2: (Cr, C), b2: (1, C)."""
    B, C, H, W = x_nchw.shape
    HW = H * W
    Cr = w1.shape[1]
    x = x_nchw.reshape(B, C, HW)        # metadata-only reshape, no HBM transpose
    itemsize = jnp.dtype(x.dtype).itemsize
    vmem_limit, auto_cap = _vmem_plan()
    fused_cap = auto_cap if fused_cap_bytes is None else fused_cap_bytes
    slab_bytes = C * HW * itemsize      # one batch worth of x

    if block_hw is None and slab_bytes <= fused_cap:
        # ---- Fused single pass: x is read from HBM exactly once. ----
        bb = _pick_batch_block(B, slab_bytes, fused_cap)
        out = pl.pallas_call(
            functools.partial(_fused_se_kernel, inv_hw=1.0 / HW),
            out_shape=jax.ShapeDtypeStruct((B, C, HW), x.dtype),
            grid=(B // bb,),
            in_specs=[
                pl.BlockSpec((bb, C, HW), lambda b: (b, 0, 0)),
                pl.BlockSpec((C, Cr), lambda b: (0, 0)),
                pl.BlockSpec((1, Cr), lambda b: (0, 0)),
                pl.BlockSpec((Cr, C), lambda b: (0, 0)),
                pl.BlockSpec((1, C), lambda b: (0, 0)),
            ],
            out_specs=pl.BlockSpec((bb, C, HW), lambda b: (b, 0, 0)),
            compiler_params=pltpu.CompilerParams(
                dimension_semantics=("parallel",),
                vmem_limit_bytes=vmem_limit),
            cost_estimate=pl.CostEstimate(
                flops=2 * B * C * HW + 4 * B * C * Cr,
                transcendentals=B * C,
                bytes_accessed=2 * B * C * HW * itemsize),
        )(x, w1, b1, w2, b2)
    else:
        # ---- Two-pass streamed fallback for slabs too large to keep resident. ----
        if block_hw is None:
            block_hw = _pick_block_hw(HW, C, itemsize)
        out = _se_two_pass(x, w1, b1, w2, b2, block_hw, vmem_limit)

    return out.reshape(B, C, H, W)


def init_params(key, input_channels, reduction_ratio=16):
    """Kaiming-uniform (fan_in, relu) init, zero biases (matches the PyTorch module)."""
    C = input_channels
    Cr = max(1, C // reduction_ratio)
    k1, k2 = jax.random.split(key)
    bound1 = math.sqrt(6.0 / C)    # fc1.weight (Cr, C), fan_in = C
    bound2 = math.sqrt(6.0 / Cr)   # fc2.weight (C, Cr), fan_in = Cr
    fc1_w = jax.random.uniform(k1, (Cr, C), jnp.float32, -bound1, bound1)
    fc2_w = jax.random.uniform(k2, (C, Cr), jnp.float32, -bound2, bound2)
    # Kernel uses transposed weights (y @ W^T form) and 2-D biases.
    w1 = fc1_w.T                       # (C, Cr)
    b1 = jnp.zeros((1, Cr), jnp.float32)
    w2 = fc2_w.T                       # (Cr, C)
    b2 = jnp.zeros((1, C), jnp.float32)
    return w1, b1, w2, b2


def se_block_ref(x, w1, b1, w2, b2):
    """Pure-JAX reference of the PyTorch forward."""
    B, C, H, W = x.shape
    pooled = jnp.mean(x.reshape(B, C, H * W), axis=-1)
    h = jnp.maximum(pooled @ w1 + b1, 0.0)
    gate = jnp.tanh(h @ w2 + b2)
    return x * gate[:, :, None, None]


if __name__ == "__main__":
    key = jax.random.PRNGKey(0)
    k1, k2, k3, kp1, kp2, kp3 = jax.random.split(key, 6)

    # Test 1: fused single-pass path, lane-aligned HW (x read from HBM once).
    B, C, H, W = 2, 128, 32, 32
    x = jax.random.normal(k1, (B, C, H, W), jnp.float32)
    params = init_params(kp1, C, reduction_ratio=16)
    out = jax.block_until_ready(se_block(x, *params))
    ref = se_block_ref(x, *params)
    assert out.shape == (B, C, H, W)
    assert jnp.allclose(out, ref, atol=2e-5, rtol=2e-5), "fused path mismatch"

    # Test 2: forced two-pass streamed path: odd B, HW not a multiple of 128
    # (exercises masked tail tiles, the parallel HW-half split + combine, the
    #  plain-JAX MLP between passes, and the lane-replicated gate).
    B, C, H, W = 3, 128, 12, 12
    x = jax.random.normal(k2, (B, C, H, W), jnp.float32)
    params = init_params(kp2, C, reduction_ratio=16)
    out = jax.block_until_ready(se_block(x, *params, block_hw=128, fused_cap_bytes=0))
    ref = se_block_ref(x, *params)
    assert jnp.allclose(out, ref, atol=2e-5, rtol=2e-5), "two-pass path mismatch"

    # Test 3: fused path with tiny 7x7 spatial (multiple batches packed per block).
    B, C, H, W = 4, 64, 7, 7
    x = jax.random.normal(k3, (B, C, H, W), jnp.float32)
    params = init_params(kp3, C, reduction_ratio=16)
    out = jax.block_until_ready(se_block(x, *params))
    ref = se_block_ref(x, *params)
    assert jnp.allclose(out, ref, atol=2e-5, rtol=2e-5), "small-HW fused mismatch"

    print("KERNEL_OK")
</pallas_src>

<mosaic_0001>
module attributes {stable_mosaic.version = 11 : i64} {
  func.func @_fused_se_kernel(%arg0: i32, %arg1: memref<1x128x1024xf32, #tpu.memory_space<vmem>>, %arg2: memref<128x8xf32, #tpu.memory_space<vmem>>, %arg3: memref<1x8xf32, #tpu.memory_space<vmem>>, %arg4: memref<8x128xf32, #tpu.memory_space<vmem>>, %arg5: memref<1x128xf32, #tpu.memory_space<vmem>>, %arg6: memref<1x128x1024xf32, #tpu.memory_space<vmem>>) attributes {dimension_semantics = [#tpu.dimension_semantics<parallel>], iteration_bounds = array<i64: 2>, scalar_prefetch = 0 : i64, scratch_operands = 0 : i64, tpu.core_type = #tpu.core_type<tc>, window_params = [{transform_indices = @transform_0, window_bounds = array<i64: 1, 128, 1024>}, {pipeline_mode = #tpu.pipeline_mode<synchronous>, transform_indices = @transform_1, window_bounds = array<i64: 128, 8>}, {pipeline_mode = #tpu.pipeline_mode<synchronous>, transform_indices = @transform_2, window_bounds = array<i64: 1, 8>}, {pipeline_mode = #tpu.pipeline_mode<synchronous>, transform_indices = @transform_3, window_bounds = array<i64: 8, 128>}, {pipeline_mode = #tpu.pipeline_mode<synchronous>, transform_indices = @transform_4, window_bounds = array<i64: 1, 128>}, {transform_indices = @transform_5, window_bounds = array<i64: 1, 128, 1024>}]} {
    %c0 = arith.constant 0 : index
    %c0_0 = arith.constant 0 : index
    %c0_1 = arith.constant 0 : index
    %0 = vector.load %arg1[%c0, %c0_0, %c0_1] : memref<1x128x1024xf32, #tpu.memory_space<vmem>>, vector<1x128x1024xf32>
    %cst = arith.constant dense<0.000000e+00> : vector<1x128xf32>
    %1 = vector.multi_reduction <add>, %0, %cst [2] : vector<1x128x1024xf32> to vector<1x128xf32>
    %cst_2 = arith.constant 9.765625E-4 : f32
    %2 = vector.broadcast %cst_2 : f32 to vector<1x128xf32>
    %3 = arith.mulf %1, %2 : vector<1x128xf32>
    %c0_3 = arith.constant 0 : index
    %c0_4 = arith.constant 0 : index
    %4 = vector.load %arg2[%c0_3, %c0_4] : memref<128x8xf32, #tpu.memory_space<vmem>>, vector<128x8xf32>
    %cst_5 = arith.constant dense<0.000000e+00> : vector<1x8xf32>
    %5 = tpu.matmul %3, %4, %cst_5 {dimension_numbers = #tpu.dot_dimension_numbers<[1], [0], [0], [1], [0, 0, 1, 1], [], []>} : vector<1x128xf32>, vector<128x8xf32>, vector<1x8xf32> -> vector<1x8xf32>
    %c0_6 = arith.constant 0 : index
    %c0_7 = arith.constant 0 : index
    %6 = vector.load %arg3[%c0_6, %c0_7] : memref<1x8xf32, #tpu.memory_space<vmem>>, vector<1x8xf32>
    %7 = arith.addf %5, %6 : vector<1x8xf32>
    %cst_8 = arith.constant 0.000000e+00 : f32
    %8 = vector.broadcast %cst_8 : f32 to vector<1x8xf32>
    %9 = arith.maximumf %7, %8 : vector<1x8xf32>
    %c0_9 = arith.constant 0 : index
    %c0_10 = arith.constant 0 : index
    %10 = vector.load %arg4[%c0_9, %c0_10] : memref<8x128xf32, #tpu.memory_space<vmem>>, vector<8x128xf32>
    %cst_11 = arith.constant dense<0.000000e+00> : vector<1x128xf32>
    %11 = tpu.matmul %9, %10, %cst_11 {dimension_numbers = #tpu.dot_dimension_numbers<[1], [0], [0], [1], [0, 0, 1, 1], [], []>} : vector<1x8xf32>, vector<8x128xf32>, vector<1x128xf32> -> vector<1x128xf32>
    %c0_12 = arith.constant 0 : index
    %c0_13 = arith.constant 0 : index
    %12 = vector.load %arg5[%c0_12, %c0_13] : memref<1x128xf32, #tpu.memory_space<vmem>>, vector<1x128xf32>
    %13 = arith.addf %11, %12 : vector<1x128xf32>
    %14 = math.tanh %13 : vector<1x128xf32>
    %15 = vector.shape_cast %14 : vector<1x128xf32> to vector<1x128x1xf32>
    %16 = vector.broadcast %15 : vector<1x128x1xf32> to vector<1x128x1024xf32>
    %17 = arith.mulf %0, %16 : vector<1x128x1024xf32>
    %c0_14 = arith.constant 0 : index
    %c0_15 = arith.constant 0 : index
    %c0_16 = arith.constant 0 : index
    %18 = vector.load %arg6[%c0_14, %c0_15, %c0_16] : memref<1x128x1024xf32, #tpu.memory_space<vmem>>, vector<1x128x1024xf32>
    tpu.vector_store %arg6[%c0_14, %c0_15, %c0_16], %17 {strides = array<i32>} : memref<1x128x1024xf32, #tpu.memory_space<vmem>>, vector<1x128x1024xf32>,
    return
  }
  func.func @transform_0(%arg0: i32) -> (i32, i32, i32) {
    %c0_i32 = arith.constant 0 : i32
    %c0_i32_0 = arith.constant 0 : i32
    %c0_i32_1 = arith.constant 0 : i32
    return %arg0, %c0_i32, %c0_i32_0 : i32, i32, i32
  }
  func.func @transform_1(%arg0: i32) -> (i32, i32) {
    %c0_i32 = arith.constant 0 : i32
    %c0_i32_0 = arith.constant 0 : i32
    %c0_i32_1 = arith.constant 0 : i32
    return %c0_i32, %c0_i32_0 : i32, i32
  }
  func.func @transform_2(%arg0: i32) -> (i32, i32) {
    %c0_i32 = arith.constant 0 : i32
    %c0_i32_0 = arith.constant 0 : i32
    %c0_i32_1 = arith.constant 0 : i32
    return %c0_i32, %c0_i32_0 : i32, i32
  }
  func.func @transform_3(%arg0: i32) -> (i32, i32) {
    %c0_i32 = arith.constant 0 : i32
    %c0_i32_0 = arith.constant 0 : i32
    %c0_i32_1 = arith.constant 0 : i32
    return %c0_i32, %c0_i32_0 : i32, i32
  }
  func.func @transform_4(%arg0: i32) -> (i32, i32) {
    %c0_i32 = arith.constant 0 : i32
    %c0_i32_0 = arith.constant 0 : i32
    %c0_i32_1 = arith.constant 0 : i32
    return %c0_i32, %c0_i32_0 : i32, i32
  }
  func.func @transform_5(%arg0: i32) -> (i32, i32, i32) {
    %c0_i32 = arith.constant 0 : i32
    %c0_i32_0 = arith.constant 0 : i32
    %c0_i32_1 = arith.constant 0 : i32
    return %arg0, %c0_i32, %c0_i32_0 : i32, i32, i32
  }
}

</mosaic_0001>

<bundles_post_ra>
// kernel: tpu_custom_call.1
= control target key start
LH: loop header
LB: loop body
LE: loop exit
PB: predicated region body
PF: predicated region fallthrough
CT: control target
= control target key end

     0   :  { %10 = vsyncpa [#allocation3], 0  ;;  %s2567_s0 = inlined_call_operand.hbm [shape: f32[2,128,1024], index: 0, kind: input, shape index: {}]   ;;  %s2568_s1 = inlined_call_operand.vmem [shape: f32[128,8], index: 1, kind: input, shape index: {}]   ;;  %s2569_s2 = inlined_call_operand.vmem [shape: f32[1,8], index: 2, kind: input, shape index: {}]   ;;  %s2570_s3 = inlined_call_operand.vmem [shape: f32[8,128], index: 3, kind: input, shape index: {}]   ;;  %s2571_s4 = inlined_call_operand.vmem [shape: f32[1,128], index: 4, kind: input, shape index: {}]   ;;  %s2572_s5 = inlined_call_operand.hbm [shape: f32[2,128,1024], index: 5, kind: output, shape index: {}]  }
   0x1   :  { %12 = vsyncpa [#allocation3 + $0x1], 0 }
   0x2   :  { %13 = vsyncpa [#allocation4], 0 }
   0x3   :  { %15 = vsyncpa [#allocation4 + $0x1], 0  ;;  %s1526_s18 = smov 0   ;;  %s1528_s19 = smov 0  }
   0x4   :  { %s1530_s20 = smov 0   ;;  %s1532_s21 = smov 0  }
   0x5 LB: > { %s1547_s22 = sadd.s32 4294967295, %s1485_s21   ;;  %s1234_s23 = sadd.s32 4294967294, %s1485_s21   ;;  %s1485_s21 = sphi %s1532_s21, %s2858_s21   ;;  %s1481_s20 = sphi %s1530_s20, %s2857_s20   ;;  %s1477_s19 = sphi %s1528_s19, %s2856_s19   ;;  %s1473_s18 = sphi %s1526_s18, %s2855_s18  }
   0x6   : > { %s1551_s24 = sadd.s32 1, %s1485_s21   ;;  %s28_s25 = sadd.s32 1, %s1481_s20 }
   0x7   : > { %s25_s26 = ssub.s32 %s1485_s21, %s1551_s24  ;;  %p35_p0 = scmp.ne.s32.totalorder %s1481_s20, %s1477_s19 }
   0x8   : > { %p26_p1 = scmp.eq.s32.totalorder %s25_s26, 0  ;;  %p36_p2 = scmp.eq.s32.totalorder %s1485_s21, 0 }
   0x9   : > { %p41_p3 = scmp.ne.s32.totalorder %s1477_s19, %s1473_s18  ;;  %p42_p4 = scmp.eq.s32.totalorder %s1547_s22, 0 }
   0xa   : > { %s1563_s27 = scalar_select %p26_p1, %s1481_s20, %s28_s25  }
   0xb   : > { %p1565_p5 = por %p36_p2, %p35_p0  ;;  %p1569_p6 = por %p42_p4, %p41_p3 }
   0xc   : > { %p149_p7 = scmp.eq.s32.totalorder %s1547_s22, 1  ;;  %p155_p8 = scmp.eq.s32.totalorder %s1234_s23, 1 }
   0xd   : > { %p1346_p10 = scmp.lt.s32.totalorder %s1485_s21, 2  ;;  %s187_s7 = sand.u32 1, %s1481_s20  }
   0xe   : > { %p1576_p11 = por %p149_p7, %p35_p0  ;;  %p1580_p12 = por %p155_p8, %p41_p3 }
   0xf   : > { %s1249_s8 = sshll.u32 %s1485_s21, 14  ;;  %s1237_s9 = sshll.u32 %s187_s7, 10 }
  0x10   : > { %s2668_s30 = scalar_select %p1576_p11, 1, 0 }
  0x11   : > { %s2669_s6 = scalar_select %p1580_p12, 1, 0 }
  0x12   : > { %s1589_s12 = scalar_lea.hbm %s2567_s0, %s1249_s8  ;;  %s191_s13 = scalar_lea.vmem [#allocation2], %s1237_s9 }
  0x13   : > { %s198_s14 = sshll.u32 %s191_s13, 4  ;;  %p1593_p13 = pnand %p1346_p10, %p1565_p5  ;;  %s1597_s14 = int_to_ptr.vmem [resolvable:$true] %s198_s14 }
  0x14   : > { %s1599_s16 = scalar_lea.sflag [#allocation3], %s187_s7  ;;  %s1389_s17 = scalar_lea.hbm %s1589_s12, 16384 }
  0x15   : > { %p1390_p0 = scmp.ne.s32.totalorder %s1589_s12, %s1389_s17  ;;  %p1391_p1 = pneg %p1593_p13 }
  0x16   : > { %s1394_s26 = scalar_lea.hbm %s2567_s0, 32768  ;;  %p1395_p4 = scmp.lt.u32.totalorder %s1589_s12, %s2567_s0 }
  0x17   : > { %p1392_p2 = pnand %p1391_p1, %p1390_p0  ;;  %p1396_p5 = scmp.lt.u32.totalorder %s1394_s26, %s1389_s17 }
  0x18   : > { %p1398_p8 = scmp.lt.u32.totalorder %s1389_s17, %s1589_s12 }
  0x19   : > { %p1393_p3 = pneg %p1392_p2  ;;  %p1397_p7 = por %p1396_p5, %p1395_p4 }
  0x1b   : > { %p1399_p10 = por %p1398_p8, %p1397_p7 }
  0x1d   : > { %p1400_p9 = pnand %p1399_p10, %p1393_p3 }
  0x1f   : > { %1403 = shalt.err (!%p1400_p9)
}
  0x20   : > { %s1404_s7 = scalar_lea.vmem %s1597_s14, 16384  ;;  %s1487_s9 = smov [#allocation2]  }
  0x21   : > { %p1405_p0 = scmp.ne.s32.totalorder %s1597_s14, %s1404_s7  ;;  %s1409_s10 = sshll.u32 %s1487_s9, 4  ;;  %s1410_s10 = int_to_ptr.vmem [resolvable:$false] %s1409_s10 }
  0x22   : > { %s1411_s11 = scalar_lea.vmem %s1410_s10, 32768  ;;  %p1412_p11 = scmp.lt.s32.totalorder %s1597_s14, %s1410_s10 }
  0x23   : > { %p1407_p2 = pnand %p1405_p0, %p1391_p1  ;;  %p1413_p4 = scmp.lt.s32.totalorder %s1411_s11, %s1404_s7 }
  0x25   : > { %p1408_p12 = pneg %p1407_p2  ;;  %p1414_p5 = por %p1413_p4, %p1412_p11 }
  0x27   : > { %p1415_p7 = pnand %p1414_p5, %p1408_p12 }
  0x29   : > { %1418 = shalt.err (!%p1415_p7)
}
  0x2a   : > { %s1488_s13 = smov 1024   ;;  %s1489_s17 = smov 64  }
  0x2b   : > { %1341 = dma.hbm_to_vmem [thread:$0]  (!%p1593_p13), %s1589_s12, 16384, %s1597_s14, %s1599_s16, %s1488_s13, %s1488_s13, %s1489_s17  }
  0x2c   : > { %p1240_p9 = scmp.ge.s32.totalorder %s1485_s21, 1  ;;  %p206_p1 = scmp.lt.s32.totalorder %s1485_s21, 3 }
  0x2e   : > { %p207_p3 = pnand %p1240_p9, %p206_p1 }
  0x30   : > { %210 = sbr.rel (%p207_p3) target bundleno = 909 (0x38d), region = 40 }
  0x37   : > { %s1630_s23 = sand.u32 1, %s1477_s19  }
  0x38   : > { %s1241_s25 = sshll.u32 %s1630_s23, 10  ;;  %s213_s26 = scalar_lea.sflag [#allocation3], %s1630_s23 }
  0x39   : > { %s1636_s28 = scalar_lea.vmem [#allocation2], %s1241_s25 }
  0x3a   : > { %1464 = dma.done.wait (%p1569_p6), %s213_s26, 16384  }
  0x3b   : > { %1466 = vsyncadd (%p1569_p6), %s213_s26, 4294950912  ;;  %v1643_v0 = vld [vmem:[%s1636_s28] sm:$0xff]  ;;  %v1646_v1 = vld [vmem:[%s1636_s28 + $0x8] sm:$0xff]  ;;  %vm1491_vm0 = vmmov 0   ;;  %vm575_vm1 = vcmask 130112   ;;  %vm582_vm2 = vcmask 195712  }
  0x3c   : > { %v1649_v2 = vld [vmem:[%s1636_s28 + $0x10] sm:$0xff]  ;;  %v371_v3 = vadd.f32 %v1646_v1, %v1643_v0  ;;  %v1654_v4 = vld [vmem:[%s1636_s28 + $0x18] sm:$0xff]  ;;  %v1657_v5 = vld [vmem:[%s1636_s28 + $0x80] sm:$0xff]  ;;  %vm589_vm3 = vcmask 261312   ;;  %vm596_vm4 = vcmask 326912   ;;  %vm603_vm5 = vcmask 392512  }
  0x3d   : > { %v1661_v7 = vld [vmem:[%s1636_s28 + $0x88] sm:$0xff]  ;;  %v1664_v8 = vld [vmem:[%s1636_s28 + $0x90] sm:$0xff]  ;;  %v1667_v9 = vld [vmem:[%s1636_s28 + $0x20] sm:$0xff]  ;;  %vm610_vm6 = vcmask 458112   ;;  %vm617_vm7 = vcmask 523712   ;;  %vm624_vm8 = vcmask 589312  }
  0x3e   : > { %v372_v6 = vadd.f32 %v371_v3, %v1649_v2  ;;  %v389_v10 = vadd.f32 %v1661_v7, %v1657_v5  ;;  %v1673_v12 = vld [vmem:[%s1636_s28 + $0x98] sm:$0xff]  ;;  %v1676_v13 = vld [vmem:[%s1636_s28 + $0x40] sm:$0xff]  ;;  %v1679_v14 = vld [vmem:[%s1636_s28 + $0x48] sm:$0xff]  ;;  %vm631_vm9 = vcmask 654912   ;;  %vm638_vm10 = vcmask 720512   ;;  %s2266_s13 = scalar_lea.vmem [#allocation5], %s1241_s25 }
  0x3f   : > { %v1682_v15 = vld [vmem:[%s1636_s28 + $0x28] sm:$0xff]  ;;  %v1686_v17 = vld [vmem:[%s1636_s28 + $0x50] sm:$0xff]  ;;  %v380_v18 = vadd.f32 %v1679_v14, %v1676_v13  ;;  %v1695_v21 = vld [vmem:[%s1636_s28 + $0xa0] sm:$0xff]  ;;  %vm645_vm11 = vcmask 786112   ;;  %vm652_vm12 = vcmask 851712   ;;  %vm659_vm13 = vcmask 917312  }
  0x40   : > { %v373_v11 = vadd.f32 %v372_v6, %v1654_v4  ;;  %v390_v16 = vadd.f32 %v389_v10, %v1664_v8  ;;  %v1691_v19 = vld [vmem:[%s1636_s28 + $0x30] sm:$0xff]  ;;  %v1698_v22 = vld [vmem:[%s1636_s28 + $0x58] sm:$0xff]  ;;  %v1703_v25 = vld [vmem:[%s1636_s28 + $0xc0] sm:$0xff]  ;;  %vm666_vm14 = vcmask 982912   ;;  %vm673_vm15 = vcmask 1048512   ;;  %s1250_s25 = sshll.u32 %s1547_s22, 14 }
  0x41   : > { %v381_v24 = vadd.f32 %v380_v18, %v1686_v17  ;;  %v1706_v26 = vld [vmem:[%s1636_s28 + $0xc8] sm:$0xff]  ;;  %v1709_v27 = vld [vmem:[%s1636_s28 + $0xd0] sm:$0xff]  ;;  %v1712_v28 = vld [vmem:[%s1636_s28 + $0x38] sm:$0xff]  ;;  %s1161_s17 = sshll.u32 %s2266_s13, 4  ;;  %s2509_s29 = scalar_lea.hbm %s2572_s5, %s1250_s25  ;;  %s2511_s17 = int_to_ptr.vmem [resolvable:$true] %s1161_s17 }
  0x42   : > { %v374_v20 = vadd.f32 %v373_v11, %v1667_v9  ;;  %v391_v23 = vadd.f32 %v390_v16, %v1673_v12  ;;  %v1716_v30 = vld [vmem:[%s1636_s28 + $0xa8] sm:$0xff]  ;;  %v1719_v31 = vld [vmem:[%s1636_s28 + $0x60] sm:$0xff]  ;;  %v398_v32 = vadd.f32 %v1706_v26, %v1703_v25  ;;  %v1724_v33 = vld [vmem:[%s1636_s28 + $0xb0] sm:$0xff]  ;;  %s1148_s12 = scalar_lea.sflag [#allocation4], %s1630_s23  ;;  %s1419_s14 = scalar_lea.vmem %s2511_s17, 16384 }
  0x43   : > { %v382_v35 = vadd.f32 %v381_v24, %v1698_v22  ;;  %v1729_v36 = vld [vmem:[%s1636_s28 + $0xd8] sm:$0xff]  ;;  %v1732_v37 = vld [vmem:[%s1636_s28 + $0x100] sm:$0xff]  ;;  %v1736_v39 = vld [vmem:[%s1636_s28 + $0x68] sm:$0xff]  ;;  %p1420_p6 = scmp.ne.s32.totalorder %s2511_s17, %s1419_s14  ;;  %p2852_p11 = scmp.ne.s32.totalorder %s2668_s30, 0 }
  0x44   : > { %v375_v29 = vadd.f32 %v374_v20, %v1682_v15  ;;  %v392_v34 = vadd.f32 %v391_v23, %v1695_v21  ;;  %v399_v40 = vadd.f32 %v398_v32, %v1709_v27  ;;  %v1740_v41 = vld [vmem:[%s1636_s28 + $0x108] sm:$0xff]  ;;  %v1743_v42 = vld [vmem:[%s1636_s28 + $0x110] sm:$0xff]  ;;  %v1746_v43 = vld [vmem:[%s1636_s28 + $0xb8] sm:$0xff] }
  0x45   : > { %v1750_v45 = vld [vmem:[%s1636_s28 + $0x70] sm:$0xff]  ;;  %v383_v46 = vadd.f32 %v382_v35, %v1719_v31  ;;  %v1754_v47 = vld [vmem:[%s1636_s28 + $0xe0] sm:$0xff]  ;;  %v407_v48 = vadd.f32 %v1740_v41, %v1732_v37  ;;  %v1761_v51 = vld [vmem:[%s1636_s28 + $0x118] sm:$0xff]  ;;  %p1421_p12 = pnand %p1420_p6, %p2852_p11 }
  0x46   : > { %v376_v38 = vadd.f32 %v375_v29, %v1691_v19  ;;  %v393_v44 = vadd.f32 %v392_v34, %v1716_v30  ;;  %v400_v50 = vadd.f32 %v399_v40, %v1729_v36  ;;  %v1764_v52 = vld [vmem:[%s1636_s28 + $0x140] sm:$0xff]  ;;  %v1767_v53 = vld [vmem:[%s1636_s28 + $0x148] sm:$0xff]  ;;  %v1771_v55 = vld [vmem:[%s1636_s28 + $0x78] sm:$0xff] }
  0x47   : > { %2671 = vst [vmem:[#allocation8_spill] sm:$0xff] %v1764_v52  ;;  %2672 = vst [vmem:[#allocation9_spill] sm:$0xff] %v1767_v53  ;;  %v384_v56 = vadd.f32 %v383_v46, %v1736_v39  ;;  %v1775_v57 = vld [vmem:[%s1636_s28 + $0xe8] sm:$0xff]  ;;  %v408_v58 = vadd.f32 %v407_v48, %v1743_v42  ;;  %v1779_v59 = vld [vmem:[%s1636_s28 + $0x150] sm:$0xff]  ;;  %v416_v60 = vadd.f32 %v1767_v53, %v1764_v52  ;;  %p1422_p13 = pneg %p1421_p12 }
  0x48   : > { %v377_v49 = vadd.f32 %v376_v38, %v1712_v28  ;;  %v394_v54 = vadd.f32 %v393_v44, %v1724_v33  ;;  %2673 = vst [vmem:[#allocation10_spill] sm:$0xff] %v1779_v59  ;;  %v1784_v61 = vld [vmem:[%s1636_s28 + $0xf0] sm:$0xff]  ;;  %v401_v62 = vadd.f32 %v400_v50, %v1754_v47  ;;  %v1788_v63 = vld [vmem:[%s1636_s28 + $0x120] sm:$0xff]  ;;  %v1791_v3 = vld [vmem:[%s1636_s28 + $0x158] sm:$0xff] }
  0x49   : > { %2674 = vst [vmem:[#allocation11_spill] sm:$0xff] %v1784_v61  ;;  %2675 = vst [vmem:[#allocation12_spill] sm:$0xff] %v1791_v3  ;;  %v385_v10 = vadd.f32 %v384_v56, %v1750_v45  ;;  %v409_v11 = vadd.f32 %v408_v58, %v1761_v51  ;;  %v417_v16 = vadd.f32 %v416_v60, %v1779_v59  ;;  %v1798_v18 = vld [vmem:[%s1636_s28 + $0x180] sm:$0xff]  ;;  %v1801_v20 = vld [vmem:[%s1636_s28 + $0x188] sm:$0xff] }
  0x4a   : > { %378 = vadd.xlane.f32.xlu0 %v377_v49  ;;  %v395_v6 = vadd.f32 %v394_v54, %v1746_v43  ;;  %2676 = vst [vmem:[#allocation13_spill] sm:$0xff] %v1798_v18  ;;  %2677 = vst [vmem:[#allocation14_spill] sm:$0xff] %v1801_v20  ;;  %v1804_v23 = vld [vmem:[%s1636_s28 + $0x190] sm:$0xff]  ;;  %v1807_v24 = vld [vmem:[%s1636_s28 + $0xf8] sm:$0xff]  ;;  %v402_v29 = vadd.f32 %v401_v62, %v1775_v57  ;;  %v425_v35 = vadd.f32 %v1801_v20, %v1798_v18 }
  0x4b   : > { %2678 = vst [vmem:[#allocation15_spill] sm:$0xff] %v1804_v23  ;;  %2679 = vst [vmem:[#allocation16_spill] sm:$0xff] %v1807_v24  ;;  %v1811_v32 = vld [vmem:[%s1636_s28 + $0x128] sm:$0xff]  ;;  %v1814_v34 = vld [vmem:[%s1636_s28 + $0x160] sm:$0xff]  ;;  %v386_v38 = vadd.f32 %v385_v10, %v1771_v55  ;;  %v410_v44 = vadd.f32 %v409_v11, %v1788_v63  ;;  %v418_v46 = vadd.f32 %v417_v16, %v1791_v3 }
  0x4c   : > { %2680 = vst [vmem:[#allocation17_spill] sm:$0xff] %v1814_v34  ;;  %396 = vadd.xlane.f32.xlu1 %v395_v6  ;;  %v1820_v40 = vld [vmem:[%s1636_s28 + $0x130] sm:$0xff]  ;;  %v1825_v48 = vld [vmem:[%s1636_s28 + $0x198] sm:$0xff]  ;;  %v1828_v49 = vld [vmem:[%s1636_s28 + $0x1c0] sm:$0xff]  ;;  %v403_v50 = vadd.f32 %v402_v29, %v1784_v61  ;;  %v426_v56 = vadd.f32 %v425_v35, %v1804_v23 }
  0x4d   : > { %2681 = vst [vmem:[#allocation18_spill] sm:$0xff] %v1825_v48  ;;  %2682 = vst [vmem:[#allocation19_spill] sm:$0xff] %v1828_v49  ;;  %v1832_v54 = vld [vmem:[%s1636_s28 + $0x168] sm:$0xff]  ;;  %v1839_v60 = vld [vmem:[%s1636_s28 + $0x1d0] sm:$0xff]  ;;  %v411_v6 = vadd.f32 %v410_v44, %v1811_v32  ;;  %v419_v11 = vadd.f32 %v418_v46, %v1814_v34 }
  0x4e   : > { %2683 = vst [vmem:[#allocation20_spill] sm:$0xff] %v1832_v54  ;;  %v1836_v58 = vld [vmem:[%s1636_s28 + $0x1c8] sm:$0xff]  ;;  %2685 = vst [vmem:[#allocation22_spill] sm:$0xff] %v1839_v60  ;;  %387 = vadd.xlane.f32.xlu0 %v386_v38  ;;  %v1842_v62 = vld [vmem:[%s1636_s28 + $0x138] sm:$0xff]  ;;  %v404_v35 = vadd.f32 %v403_v50, %v1807_v24  ;;  %v427_v38 = vadd.f32 %v426_v56, %v1825_v48 }
  0x4f   : > { %2684 = vst [vmem:[#allocation21_spill] sm:$0xff] %v1836_v58  ;;  %v1846_v10 = vld [vmem:[%s1636_s28 + $0x170] sm:$0xff]  ;;  %v1850_v16 = vld [vmem:[%s1636_s28 + $0x1a0] sm:$0xff]  ;;  %v434_v29 = vadd.f32 %v1836_v58, %v1828_v49  ;;  %v1857_v3 = vld [vmem:[%s1636_s28 + $0x1d8] sm:$0xff]  ;;  %v412_v46 = vadd.f32 %v411_v6, %v1820_v40  ;;  %v420_v58 = vadd.f32 %v419_v11, %v1832_v54 }
  0x50   : > { %2686 = vst [vmem:[#allocation23_spill] sm:$0xff] %v1846_v10  ;;  %2687 = vst [vmem:[#allocation24_spill] sm:$0xff] %v1850_v16  ;;  %v1860_v59 = vld [vmem:[%s1636_s28 + $0x200] sm:$0xff]  ;;  %v1863_v44 = vld [vmem:[%s1636_s28 + $0x208] sm:$0xff]  ;;  %405 = vadd.xlane.f32.xlu1 %v404_v35  ;;  %v428_v52 = vadd.f32 %v427_v38, %v1850_v16 }
  0x51   : > { %2688 = vst [vmem:[#allocation25_spill] sm:$0xff] %v1857_v3  ;;  %2689 = vst [vmem:[#allocation26_spill] sm:$0xff] %v1860_v59  ;;  %v1867_v34 = vld [vmem:[%s1636_s28 + $0x178] sm:$0xff]  ;;  %v1871_v49 = vld [vmem:[%s1636_s28 + $0x1a8] sm:$0xff]  ;;  %v435_v50 = vadd.f32 %v434_v29, %v1839_v60  ;;  %v443_v53 = vadd.f32 %v1863_v44, %v1860_v59  ;;  %v413_v54 = vadd.f32 %v412_v46, %v1842_v62 }
  0x52   : > { %2690 = vst [vmem:[#allocation27_spill] sm:$0xff] %v1863_v44  ;;  %2691 = vst [vmem:[#allocation28_spill] sm:$0xff] %v1867_v34  ;;  %v1875_v56 = vld [vmem:[%s1636_s28 + $0x210] sm:$0xff]  ;;  %v1884_v48 = vld [vmem:[%s1636_s28 + $0x1e0] sm:$0xff]  ;;  %v421_v29 = vadd.f32 %v420_v58, %v1846_v10  ;;  %v429_v46 = vadd.f32 %v428_v52, %v1871_v49 }
  0x53   : > { %2692 = vst [vmem:[#allocation29_spill] sm:$0xff] %v1871_v49  ;;  %2693 = vst [vmem:[#allocation30_spill] sm:$0xff] %v1875_v56  ;;  %v1880_v6 = vld [vmem:[%s1636_s28 + $0x1b0] sm:$0xff]  ;;  %v1887_v11 = vld [vmem:[%s1636_s28 + $0x218] sm:$0xff]  ;;  %v436_v60 = vadd.f32 %v435_v50, %v1857_v3  ;;  %v444_v44 = vadd.f32 %v443_v53, %v1875_v56  ;;  %414 = vadd.xlane.f32.xlu0 %v413_v54 }
  0x54   : > { %2694 = vst [vmem:[#allocation31_spill] sm:$0xff] %v1880_v6  ;;  %2695 = vst [vmem:[#allocation32_spill] sm:$0xff] %v1884_v48  ;;  %v1894_v35 = vld [vmem:[%s1636_s28 + $0x240] sm:$0xff]  ;;  %v1897_v59 = vld [vmem:[%s1636_s28 + $0x248] sm:$0xff]  ;;  %v422_v3 = vadd.f32 %v421_v29, %v1867_v34  ;;  %v430_v20 = vadd.f32 %v429_v46, %v1880_v6 }
  0x55   : > { %2696 = vst [vmem:[#allocation33_spill] sm:$0xff] %v1887_v11  ;;  %2697 = vst [vmem:[#allocation34_spill] sm:$0xff] %v1894_v35  ;;  %v1900_v38 = vld [vmem:[%s1636_s28 + $0x250] sm:$0xff]  ;;  %v1903_v16 = vld [vmem:[%s1636_s28 + $0x1b8] sm:$0xff]  ;;  %v452_v53 = vadd.f32 %v1897_v59, %v1894_v35  ;;  %v437_v10 = vadd.f32 %v436_v60, %v1884_v48  ;;  %v445_v23 = vadd.f32 %v444_v44, %v1887_v11 }
  0x56   : > { %2698 = vst [vmem:[#allocation35_spill] sm:$0xff] %v1897_v59  ;;  %2699 = vst [vmem:[#allocation36_spill] sm:$0xff] %v1900_v38  ;;  %v1907_v58 = vld [vmem:[%s1636_s28 + $0x1e8] sm:$0xff]  ;;  %v1910_v50 = vld [vmem:[%s1636_s28 + $0x220] sm:$0xff]  ;;  %423 = vadd.xlane.f32.xlu1 %v422_v3 }
  0x57   : > { %2700 = vst [vmem:[#allocation37_spill] sm:$0xff] %v1903_v16  ;;  %2701 = vst [vmem:[#allocation38_spill] sm:$0xff] %v1907_v58  ;;  %v1916_v56 = vld [vmem:[%s1636_s28 + $0x1f0] sm:$0xff]  ;;  %v1921_v52 = vld [vmem:[%s1636_s28 + $0x258] sm:$0xff]  ;;  %v453_v54 = vadd.f32 %v452_v53, %v1900_v38  ;;  %v438_v44 = vadd.f32 %v437_v10, %v1907_v58  ;;  %v446_v46 = vadd.f32 %v445_v23, %v1910_v50 }
  0x58   : > { %2702 = vst [vmem:[#allocation39_spill] sm:$0xff] %v1910_v50  ;;  %2703 = vst [vmem:[#allocation40_spill] sm:$0xff] %v1916_v56  ;;  %v1924_v49 = vld [vmem:[%s1636_s28 + $0x280] sm:$0xff]  ;;  %v1928_v59 = vld [vmem:[%s1636_s28 + $0x228] sm:$0xff]  ;;  %v431_v38 = vadd.f32 %v430_v20, %v1903_v16 }
  0x59   : > { %2704 = vst [vmem:[#allocation41_spill] sm:$0xff] %v1921_v52  ;;  %2705 = vst [vmem:[#allocation42_spill] sm:$0xff] %v1924_v49  ;;  %v1932_v29 = vld [vmem:[%s1636_s28 + $0x288] sm:$0xff]  ;;  %v1935_v35 = vld [vmem:[%s1636_s28 + $0x290] sm:$0xff]  ;;  %v454_v3 = vadd.f32 %v453_v54, %v1921_v52  ;;  %v439_v23 = vadd.f32 %v438_v44, %v1916_v56 }
  0x5a   : > { %2706 = vst [vmem:[#allocation43_spill] sm:$0xff] %v1928_v59  ;;  %2707 = vst [vmem:[#allocation44_spill] sm:$0xff] %v1932_v29  ;;  %v1938_v60 = vld [vmem:[%s1636_s28 + $0x1f8] sm:$0xff]  ;;  %v1942_v48 = vld [vmem:[%s1636_s28 + $0x230] sm:$0xff]  ;;  %v461_v53 = vadd.f32 %v1932_v29, %v1924_v49  ;;  %v447_v29 = vadd.f32 %v446_v46, %v1928_v59  ;;  %432 = vadd.xlane.f32.xlu0 %v431_v38 }
  0x5b   : > { %2708 = vst [vmem:[#allocation45_spill] sm:$0xff] %v1935_v35  ;;  %2709 = vst [vmem:[#allocation46_spill] sm:$0xff] %v1938_v60  ;;  %v1946_v11 = vld [vmem:[%s1636_s28 + $0x260] sm:$0xff]  ;;  %v1953_v34 = vld [vmem:[%s1636_s28 + $0x298] sm:$0xff]  ;;  %v440_v59 = vadd.f32 %v439_v23, %v1938_v60 }
  0x5c   : > { %2710 = vst [vmem:[#allocation47_spill] sm:$0xff] %v1942_v48  ;;  %2711 = vst [vmem:[#allocation48_spill] sm:$0xff] %v1946_v11  ;;  %v1956_v6 = vld [vmem:[%s1636_s28 + $0x2c0] sm:$0xff]  ;;  %v1959_v10 = vld [vmem:[%s1636_s28 + $0x2c8] sm:$0xff]  ;;  %v462_v20 = vadd.f32 %v461_v53, %v1935_v35  ;;  %v455_v56 = vadd.f32 %v454_v3, %v1946_v11  ;;  %v448_v53 = vadd.f32 %v447_v29, %v1942_v48 }
  0x5d   : > { %2712 = vst [vmem:[#allocation49_spill] sm:$0xff] %v1953_v34  ;;  %2713 = vst [vmem:[#allocation50_spill] sm:$0xff] %v1956_v6  ;;  %v1963_v58 = vld [vmem:[%s1636_s28 + $0x238] sm:$0xff]  ;;  %v1967_v49 = vld [vmem:[%s1636_s28 + $0x268] sm:$0xff]  ;;  %v470_v52 = vadd.f32 %v1959_v10, %v1956_v6  ;;  %441 = vadd.xlane.f32.xlu1 %v440_v59 }
  0x5e   : > { %2714 = vst [vmem:[#allocation51_spill] sm:$0xff] %v1959_v10  ;;  %2715 = vst [vmem:[#allocation52_spill] sm:$0xff] %v1963_v58  ;;  %v1971_v54 = vld [vmem:[%s1636_s28 + $0x2d0] sm:$0xff]  ;;  %v1980_v50 = vld [vmem:[%s1636_s28 + $0x2a0] sm:$0xff]  ;;  %v463_v35 = vadd.f32 %v462_v20, %v1953_v34  ;;  %v456_v23 = vadd.f32 %v455_v56, %v1967_v49  ;;  %v449_v20 = vadd.f32 %v448_v53, %v1963_v58 }
  0x5f   : > { %2716 = vst [vmem:[#allocation53_spill] sm:$0xff] %v1967_v49  ;;  %2717 = vst [vmem:[#allocation54_spill] sm:$0xff] %v1971_v54  ;;  %v1976_v44 = vld [vmem:[%s1636_s28 + $0x270] sm:$0xff]  ;;  %v1983_v46 = vld [vmem:[%s1636_s28 + $0x2d8] sm:$0xff]  ;;  %v471_v10 = vadd.f32 %v470_v52, %v1971_v54 }
  0x60   : > { %2718 = vst [vmem:[#allocation55_spill] sm:$0xff] %v1976_v44  ;;  %2719 = vst [vmem:[#allocation56_spill] sm:$0xff] %v1980_v50  ;;  %v1990_v38 = vld [vmem:[%s1636_s28 + $0x300] sm:$0xff]  ;;  %v1993_v6 = vld [vmem:[%s1636_s28 + $0x308] sm:$0xff]  ;;  %v464_v34 = vadd.f32 %v463_v35, %v1980_v50  ;;  %v457_v16 = vadd.f32 %v456_v23, %v1976_v44  ;;  %v2622_v35 = vmov 0.0|0.0   ;;  %450 = vadd.xlane.f32.xlu0 %v449_v20 }
  0x61   : > { %2720 = vst [vmem:[#allocation57_spill] sm:$0xff] %v1983_v46  ;;  %2721 = vst [vmem:[#allocation58_spill] sm:$0xff] %v1990_v38  ;;  %v1996_v3 = vld [vmem:[%s1636_s28 + $0x310] sm:$0xff]  ;;  %v1999_v11 = vld [vmem:[%s1636_s28 + $0x278] sm:$0xff]  ;;  %v479_v52 = vadd.f32 %v1993_v6, %v1990_v38  ;;  %v472_v48 = vadd.f32 %v471_v10, %v1983_v46  ;;  %1310 = vmatprep.subr.bf16.mxu0 %v2622_v35 }
  0x62   : > { %2722 = vst [vmem:[#allocation59_spill] sm:$0xff] %v1993_v6  ;;  %2723 = vst [vmem:[#allocation60_spill] sm:$0xff] %v1996_v3  ;;  %v2003_v29 = vld [vmem:[%s1636_s28 + $0x2a8] sm:$0xff]  ;;  %v2006_v60 = vld [vmem:[%s1636_s28 + $0x2e0] sm:$0xff]  ;;  %v458_v35 = vadd.f32 %v457_v16, %v1999_v11 }
  0x63   : > { %2724 = vst [vmem:[#allocation61_spill] sm:$0xff] %v1999_v11  ;;  %2725 = vst [vmem:[#allocation62_spill] sm:$0xff] %v2003_v29  ;;  %v2012_v54 = vld [vmem:[%s1636_s28 + $0x2b0] sm:$0xff]  ;;  %v2017_v56 = vld [vmem:[%s1636_s28 + $0x318] sm:$0xff]  ;;  %v480_v59 = vadd.f32 %v479_v52, %v1996_v3  ;;  %v465_v23 = vadd.f32 %v464_v34, %v2003_v29  ;;  %v473_v52 = vadd.f32 %v472_v48, %v2006_v60 }
  0x64   : > { %2726 = vst [vmem:[#allocation63_spill] sm:$0xff] %v2006_v60  ;;  %2727 = vst [vmem:[#allocation64_spill] sm:$0xff] %v2012_v54  ;;  %v2020_v49 = vld [vmem:[%s1636_s28 + $0x340] sm:$0xff]  ;;  %v2024_v6 = vld [vmem:[%s1636_s28 + $0x2e8] sm:$0xff]  ;;  %459 = vadd.xlane.f32.xlu1 %v458_v35 }
  0x65   : > { %2728 = vst [vmem:[#allocation65_spill] sm:$0xff] %v2017_v56  ;;  %2729 = vst [vmem:[#allocation66_spill] sm:$0xff] %v2020_v49  ;;  %v2028_v53 = vld [vmem:[%s1636_s28 + $0x348] sm:$0xff]  ;;  %v2031_v38 = vld [vmem:[%s1636_s28 + $0x350] sm:$0xff]  ;;  %v481_v20 = vadd.f32 %v480_v59, %v2017_v56  ;;  %v466_v48 = vadd.f32 %v465_v23, %v2012_v54 }
  0x66   : > { %2730 = vst [vmem:[#allocation67_spill] sm:$0xff] %v2024_v6  ;;  %2731 = vst [vmem:[#allocation68_spill] sm:$0xff] %v2028_v53  ;;  %v2035_v10 = vld [vmem:[%s1636_s28 + $0x2b8] sm:$0xff]  ;;  %v2039_v46 = vld [vmem:[%s1636_s28 + $0x2f0] sm:$0xff]  ;;  %v488_v44 = vadd.f32 %v2028_v53, %v2020_v49  ;;  %v474_v53 = vadd.f32 %v473_v52, %v2024_v6 }
  0x67   : > { %2732 = vst [vmem:[#allocation69_spill] sm:$0xff] %v2031_v38  ;;  %2733 = vst [vmem:[#allocation70_spill] sm:$0xff] %v2035_v10  ;;  %v2043_v3 = vld [vmem:[%s1636_s28 + $0x320] sm:$0xff]  ;;  %v2050_v50 = vld [vmem:[%s1636_s28 + $0x358] sm:$0xff]  ;;  %v467_v54 = vadd.f32 %v466_v48, %v2035_v10 }
  0x68   : > { %2734 = vst [vmem:[#allocation71_spill] sm:$0xff] %v2039_v46  ;;  %2735 = vst [vmem:[#allocation72_spill] sm:$0xff] %v2043_v3  ;;  %v2053_v58 = vld [vmem:[%s1636_s28 + $0x380] sm:$0xff]  ;;  %v2056_v34 = vld [vmem:[%s1636_s28 + $0x388] sm:$0xff]  ;;  %v489_v16 = vadd.f32 %v488_v44, %v2031_v38  ;;  %v482_v11 = vadd.f32 %v481_v20, %v2043_v3  ;;  %v475_v44 = vadd.f32 %v474_v53, %v2039_v46 }
  0x69   : > { %2736 = vst [vmem:[#allocation73_spill] sm:$0xff] %v2050_v50  ;;  %2737 = vst [vmem:[#allocation74_spill] sm:$0xff] %v2053_v58  ;;  %v2060_v60 = vld [vmem:[%s1636_s28 + $0x2f8] sm:$0xff]  ;;  %v2064_v49 = vld [vmem:[%s1636_s28 + $0x328] sm:$0xff]  ;;  %v497_v56 = vadd.f32 %v2056_v34, %v2053_v58  ;;  %468 = vadd.xlane.f32.xlu0 %v467_v54 }
  0x6a   : > { %2738 = vst [vmem:[#allocation75_spill] sm:$0xff] %v2056_v34  ;;  %2739 = vst [vmem:[#allocation76_spill] sm:$0xff] %v2060_v60  ;;  %v2068_v59 = vld [vmem:[%s1636_s28 + $0x390] sm:$0xff]  ;;  %v2077_v52 = vld [vmem:[%s1636_s28 + $0x360] sm:$0xff]  ;;  %v490_v34 = vadd.f32 %v489_v16, %v2050_v50  ;;  %v483_v3 = vadd.f32 %v482_v11, %v2064_v49 }
  0x6b   : > { %2740 = vst [vmem:[#allocation77_spill] sm:$0xff] %v2064_v49  ;;  %2741 = vst [vmem:[#allocation78_spill] sm:$0xff] %v2068_v59  ;;  %v2073_v23 = vld [vmem:[%s1636_s28 + $0x330] sm:$0xff]  ;;  %v2080_v6 = vld [vmem:[%s1636_s28 + $0x398] sm:$0xff]  ;;  %v498_v35 = vadd.f32 %v497_v56, %v2068_v59  ;;  %v476_v56 = vadd.f32 %v475_v44, %v2060_v60 }
  0x6c   : > { %2742 = vst [vmem:[#allocation79_spill] sm:$0xff] %v2073_v23  ;;  %2743 = vst [vmem:[#allocation80_spill] sm:$0xff] %v2077_v52  ;;  %v2085_v38 = vld [vmem:[%s1636_s28 + $0x338] sm:$0xff]  ;;  %v2090_v58 = vld [vmem:[%s1636_s28 + $0x3c0] sm:$0xff]  ;;  %v491_v16 = vadd.f32 %v490_v34, %v2077_v52 }
  0x6d   : > { %2744 = vst [vmem:[#allocation81_spill] sm:$0xff] %v2080_v6  ;;  %2745 = vst [vmem:[#allocation82_spill] sm:$0xff] %v2085_v38  ;;  %v2093_v29 = vld [vmem:[%s1636_s28 + $0x3c8] sm:$0xff]  ;;  %v2096_v20 = vld [vmem:[%s1636_s28 + $0x3d0] sm:$0xff]  ;;  %v499_v11 = vadd.f32 %v498_v35, %v2080_v6  ;;  %477 = vadd.xlane.f32.xlu1 %v476_v56 }
  0x6e   : > { %2746 = vst [vmem:[#allocation83_spill] sm:$0xff] %v2090_v58  ;;  %2747 = vst [vmem:[#allocation84_spill] sm:$0xff] %v2093_v29  ;;  %v2100_v18 = vld [vmem:[%s1636_s28 + $0x368] sm:$0xff]  ;;  %v2103_v48 = vld [vmem:[%s1636_s28 + $0x370] sm:$0xff]  ;;  %v506_v46 = vadd.f32 %v2093_v29, %v2090_v58  ;;  %v484_v29 = vadd.f32 %v483_v3, %v2073_v23 }
  0x6f   : > { %2748 = vst [vmem:[#allocation85_spill] sm:$0xff] %v2096_v20  ;;  %2749 = vst [vmem:[#allocation86_spill] sm:$0xff] %v2100_v18  ;;  %v2106_v53 = vld [vmem:[%s1636_s28 + $0x3a0] sm:$0xff]  ;;  %v2113_v50 = vld [vmem:[%s1636_s28 + $0x3a8] sm:$0xff]  ;;  %v492_v58 = vadd.f32 %v491_v16, %v2100_v18 }
  0x70   : > { %2750 = vst [vmem:[#allocation87_spill] sm:$0xff] %v2103_v48  ;;  %2751 = vst [vmem:[#allocation88_spill] sm:$0xff] %v2106_v53  ;;  %v2117_v59 = vld [vmem:[%s1636_s28 + $0x3d8] sm:$0xff]  ;;  %v531_v49 = vld [vmem:[%s2568_s1] sm:$0xff]  ;;  %v507_v54 = vadd.f32 %v506_v46, %v2096_v20  ;;  %v500_v3 = vadd.f32 %v499_v11, %v2106_v53  ;;  %v485_v20 = vadd.f32 %v484_v29, %v2085_v38 }
  0x71   : > { %2752 = vst [vmem:[#allocation89_spill] sm:$0xff] %v2113_v50  ;;  %2753 = vst [vmem:[#allocation90_spill] sm:$0xff] %v2117_v59  ;;  %v532_v34 = vld [vmem:[%s2568_s1 + $0x8] sm:$0xff]  ;;  %v533_v44 = vld [vmem:[%s2568_s1 + $0x10] sm:$0xff]  ;;  %v493_v10 = vadd.f32 %v492_v58, %v2103_v48 }
  0x72   : > { %v534_v35 = vld [vmem:[%s2568_s1 + $0x18] sm:$0xff]  ;;  %v2136_v52 = vld [vmem:[%s1636_s28 + $0x3e0] sm:$0xff]  ;;  %v1311_v46 = vpack.c.bf16 %v532_v34, %v531_v49  ;;  %v2143_v60 = vld [vmem:[%s1636_s28 + $0x3b0] sm:$0xff]  ;;  %v508_v23 = vadd.f32 %v507_v54, %v2117_v59  ;;  %v501_v56 = vadd.f32 %v500_v3, %v2113_v50  ;;  %486 = vadd.xlane.f32.xlu0 %v485_v20  ;;  %v2759_v34 = vmov 0.0|0.0  }
  0x73   : > { %2754 = vst [vmem:[#allocation91_spill] sm:$0xff] %v2136_v52  ;;  %v2140_v6 = vld [vmem:[%s1636_s28 + $0x378] sm:$0xff]  ;;  %2756 = vst [vmem:[#allocation93_spill] sm:$0xff] %v2143_v60  ;;  %v2149_v16 = vld [vmem:[%s1636_s28 + $0x3e8] sm:$0xff]  ;;  %v1314_v11 = vpack.c.bf16 %v534_v35, %v533_v44 }
  0x74   : > { %2755 = vst [vmem:[#allocation92_spill] sm:$0xff] %v2140_v6  ;;  %2757 = vst [vmem:[#allocation94_spill] sm:$0xff] %v2149_v16  ;;  %1312 = vmatpush3.bf16.msra.mxu0 %v1311_v46  ;;  %v2152_v49 = vld [vmem:[%s1636_s28 + $0x3b8] sm:$0xff]  ;;  %v509_v29 = vadd.f32 %v508_v23, %v2136_v52  ;;  %v535_v54 = vld [vmem:[%s2568_s1 + $0x20] sm:$0xff]  ;;  %v494_v3 = vadd.f32 %v493_v10, %v2140_v6  ;;  %v502_v46 = vadd.f32 %v501_v56, %v2143_v60 }
  0x75   : > { %2758 = vst [vmem:[#allocation95_spill] sm:$0xff] %v2152_v49  ;;  %1313 = vmatprep.subr.bf16.mxu0 %v2759_v34  ;;  %v536_v58 = vld [vmem:[%s2568_s1 + $0x28] sm:$0xff]  ;;  %v2165_v44 = vld [vmem:[%s1636_s28 + $0x3f0] sm:$0xff]  ;;  %v2170_v35 = vld [vmem:[%s1636_s28 + $0x3f8] sm:$0xff]  ;;  %s1493_s28 = smov [#allocation5]  }
  0x76   : > { %2760 = vst [vmem:[#allocation96_spill] sm:$0xff] %v2165_v44  ;;  %v510_v20 = vadd.f32 %v509_v29, %v2149_v16  ;;  %495 = vadd.xlane.f32.xlu1 %v494_v3  ;;  %v503_v23 = vadd.f32 %v502_v46, %v2152_v49  ;;  %2761 = vst [vmem:[#allocation97_spill] sm:$0xff] %v2170_v35  ;;  %v1317_v52 = vpack.c.bf16 %v536_v58, %v535_v54  ;;  %v537_v10 = vld [vmem:[%s2568_s1 + $0x30] sm:$0xff]  ;;  %v538_v56 = vld [vmem:[%s2568_s1 + $0x38] sm:$0xff]  ;;  %s1423_s15 = sshll.u32 %s1493_s28, 4  ;;  %s1424_s15 = int_to_ptr.vmem [resolvable:$false] %s1423_s15 }
  0x77   : > { %v1320_v3 = vpack.c.bf16 %v538_v56, %v537_v10  ;;  %v540_v54 = vld [vmem:[%s2568_s1 + $0x48] sm:$0xff]  ;;  %v545_v56 = vld [vmem:[%s2568_s1 + $0x70] sm:$0xff]  ;;  %s1425_s16 = scalar_lea.vmem %s1424_s15, 32768  ;;  %p1426_p8 = scmp.lt.s32.totalorder %s2511_s17, %s1424_s15 }
  0x78   : > { %1315 = vmatpush3.bf16.msra.mxu0 %v1314_v11  ;;  %v511_v59 = vadd.f32 %v510_v20, %v2165_v44  ;;  %504 = vadd.xlane.f32.xlu0 %v503_v23  ;;  %v539_v11 = vld [vmem:[%s2568_s1 + $0x40] sm:$0xff]  ;;  %v544_v23 = vld [vmem:[%s2568_s1 + $0x68] sm:$0xff]  ;;  %p1427_p10 = scmp.lt.s32.totalorder %s1425_s16, %s1419_s14 }
  0x79   : > { %1316 = vmatprep.subr.bf16.mxu0 %v2759_v34  ;;  %v1323_v58 = vpack.c.bf16 %v540_v54, %v539_v11  ;;  %v543_v20 = vld [vmem:[%s2568_s1 + $0x60] sm:$0xff]  ;;  %v1492_v11 = vmov 0.0   ;;  %v564_v54 = vlaneseq }
  0x7a   : > { %v512_v29 = vadd.f32 %v511_v59, %v2170_v35  ;;  %v541_v59 = vld [vmem:[%s2568_s1 + $0x50] sm:$0xff]  ;;  %v1329_v10 = vpack.c.bf16 %v544_v23, %v543_v20  ;;  %1302 = vmatprep.mubr.msk.f32.mxu0 %vm1491_vm0, %v1492_v11  ;;  %1305 = vmatprep.subr.mxu1 %v1492_v11  ;;  %p1428_p0 = por %p1427_p10, %p1426_p8 }
  0x7b   : > { %1307 = vmatprep.mubr.msk.f32.mxu1 %vm1491_vm0, %v1492_v11  ;;  %vm749_vm0 = vcmask 64512  }
  0x7c   : > { %1318 = vmatpush3.bf16.msra.mxu0 %v1317_v52  ;;  %513 = vadd.xlane.f32.xlu1 %v512_v29  ;;  %v542_v52 = vld [vmem:[%s2568_s1 + $0x58] sm:$0xff]  ;;  %p1429_p2 = pnand %p1428_p0, %p1422_p13 }
  0x7d   : > { %1319 = vmatprep.subr.bf16.mxu0 %v2759_v34  ;;  %v1326_v46 = vpack.c.bf16 %v542_v52, %v541_v59  ;;  %v546_v29 = vld [vmem:[%s2568_s1 + $0x78] sm:$0xff] }
  0x80   : > { %1321 = vmatpush3.bf16.msra.mxu0 %v1320_v3  ;;  %v1332_v3 = vpack.c.bf16 %v546_v29, %v545_v56 }
  0x81   : > { %1322 = vmatprep.subr.bf16.mxu0 %v2759_v34 }
  0x84   : > { %1324 = vmatpush3.bf16.msra.mxu0 %v1323_v58  ;;  %v2210_v58 = vand.u32 127, %v564_v54 }
  0x85   : > { %1325 = vmatprep.subr.bf16.mxu0 %v2759_v34 }
  0x86   : > { %v570_v52 = vadd.s32 4294967288, %v2210_v58  ;;  %v598_v60 = vadd.s32 4294967256, %v2210_v58 }
  0x88   : > { %1327 = vmatpush3.bf16.msra.mxu0 %v1326_v46  ;;  %v2213_v46 = vshrl.u32 %v564_v54, 7  ;;  %v591_v54 = vadd.s32 4294967264, %v2210_v58 }
  0x89   : > { %1328 = vmatprep.subr.bf16.mxu0 %v2759_v34 }
  0x8a   : > { %v573_v23 = vsub.s32 %v570_v52, %v2213_v46  ;;  %v568_v29 = vsub.s32 %v2210_v58, %v2213_v46  ;;  %v594_v53 = vsub.s32 %v591_v54, %v2213_v46 }
  0x8c   : > { %1330 = vmatpush3.bf16.msra.mxu0 %v1329_v10 }
  0x8d   : > { %1331 = vmatprep.subr.bf16.mxu0 %v2759_v34  ;;  %v577_v34 = vadd.s32 4294967280, %v2210_v58 }
  0x8f   : > { %v580_v16 = vsub.s32 %v577_v34, %v2213_v46  ;;  %v605_v34 = vadd.s32 4294967248, %v2210_v58 }
  0x90   : > { %1333 = vmatpush3.bf16.msra.mxu0 %v1332_v3  ;;  %v584_v3 = vadd.s32 4294967272, %v2210_v58 }
  0x92   : > { %v587_v52 = vsub.s32 %v584_v3, %v2213_v46  ;;  %v608_v3 = vsub.s32 %v605_v34, %v2213_v46 }
  0xd7   : > { %v379_v59 = vpop.xlane.xlu0 %378 }
  0xd8   : > { %v515_v11 = vmul.f32 0.0009765625, %v379_v59 }
  0xd9   : > { %v397_v20 = vpop.xlane.xlu1 %396 }
  0xda   : > { %v517_v6 = vmul.f32 0.0009765625, %v397_v20  ;;  %v569_v48 = vrot.slane %v515_v11, %v568_v29  ;;  %v601_v29 = vsub.s32 %v598_v60, %v2213_v46 }
  0xdb   : > { %v388_v10 = vpop.xlane.xlu0 %387 }
  0xdc   : > { %v516_v56 = vmul.f32 0.0009765625, %v388_v10  ;;  %v581_v50 = vrot.slane %v517_v6, %v580_v16 }
  0xdd   : > { %v406_v35 = vpop.xlane.xlu1 %405 }
  0xde   : > { %v574_v44 = vrot.slane %v516_v56, %v573_v23  ;;  %v518_v18 = vmul.f32 0.0009765625, %v406_v35  ;;  %v612_v35 = vadd.s32 4294967240, %v2210_v58 }
  0xe0   : > { %v415_v49 = vpop.xlane.xlu0 %414  ;;  %v576_v10 = vsel %vm575_vm1, %v574_v44, %v569_v48  ;;  %v588_v20 = vrot.slane %v518_v18, %v587_v52  ;;  %v619_v48 = vadd.s32 4294967232, %v2210_v58  ;;  %v626_v18 = vadd.s32 4294967224, %v2210_v58 }
  0xe1   : > { %v519_v23 = vmul.f32 0.0009765625, %v415_v49  ;;  %v583_v56 = vsel %vm582_vm2, %v581_v50, %v576_v10  ;;  %v615_v50 = vsub.s32 %v612_v35, %v2213_v46 }
  0xe2   : > { %v590_v16 = vsel %vm589_vm3, %v588_v20, %v583_v56  ;;  %v622_v60 = vsub.s32 %v619_v48, %v2213_v46 }
  0xe3   : > { %v424_v59 = vpop.xlane.xlu1 %423  ;;  %v595_v44 = vrot.slane %v519_v23, %v594_v53  ;;  %v633_v53 = vadd.s32 4294967216, %v2210_v58 }
  0xe4   : > { %v520_v11 = vmul.f32 0.0009765625, %v424_v59 }
  0xe5   : > { %v597_v59 = vsel %vm596_vm4, %v595_v44, %v590_v16  ;;  %v636_v48 = vsub.s32 %v633_v53, %v2213_v46 }
  0xe6   : > { %v602_v54 = vrot.slane %v520_v11, %v601_v29  ;;  %v640_v29 = vadd.s32 4294967208, %v2210_v58 }
  0xe7   : > { %v433_v38 = vpop.xlane.xlu0 %432 }
  0xe8   : > { %v521_v6 = vmul.f32 0.0009765625, %v433_v38  ;;  %v629_v38 = vsub.s32 %v626_v18, %v2213_v46  ;;  %v604_v34 = vsel %vm603_vm5, %v602_v54, %v597_v59  ;;  %v643_v18 = vsub.s32 %v640_v29, %v2213_v46 }
  0xe9   : > { %v661_v59 = vadd.s32 4294967184, %v2210_v58 }
  0xea   : > { %v442_v49 = vpop.xlane.xlu1 %441  ;;  %v609_v24 = vrot.slane %v521_v6, %v608_v3  ;;  %v647_v3 = vadd.s32 4294967200, %v2210_v58 }
  0xeb   : > { %v522_v52 = vmul.f32 0.0009765625, %v442_v49 }
  0xec   : > { %v611_v11 = vsel %vm610_vm6, %v609_v24, %v604_v34  ;;  %v654_v24 = vadd.s32 4294967192, %v2210_v58 }
  0xed   : > { %v451_v10 = vpop.xlane.xlu0 %450  ;;  %v616_v20 = vrot.slane %v522_v52, %v615_v50 }
  0xee   : > { %v523_v61 = vmul.f32 0.0009765625, %v451_v10 }
  0xef   : > { %v618_v16 = vsel %vm617_vm7, %v616_v20, %v611_v11  ;;  %v668_v11 = vadd.s32 4294967176, %v2210_v58 }
  0xf0   : > { %v623_v35 = vrot.slane %v523_v61, %v622_v60  ;;  %v650_v61 = vsub.s32 %v647_v3, %v2213_v46 }
  0xf1   : > { %v460_v23 = vpop.xlane.xlu1 %459 }
  0xf2   : > { %v524_v56 = vmul.f32 0.0009765625, %v460_v23  ;;  %v625_v50 = vsel %vm624_vm8, %v623_v35, %v618_v16 }
  0xf4   : > { %v630_v49 = vrot.slane %v524_v56, %v629_v38  ;;  %v657_v38 = vsub.s32 %v654_v24, %v2213_v46 }
  0xf6   : > { %v469_v44 = vpop.xlane.xlu0 %468  ;;  %v632_v53 = vsel %vm631_vm9, %v630_v49, %v625_v50  ;;  %v671_v49 = vsub.s32 %v668_v11, %v2213_v46 }
  0xf7   : > { %v525_v6 = vmul.f32 0.0009765625, %v469_v44 }
  0xf9   : > { %v637_v52 = vrot.slane %v525_v6, %v636_v48  ;;  %v664_v48 = vsub.s32 %v661_v59, %v2213_v46  ;;  %v547_v59 = vld [vmem:[%s2569_s2] sm:$0x1] }
  0xfa   : > { %v478_v54 = vpop.xlane.xlu1 %477 }
  0xfb   : > { %v526_v10 = vmul.f32 0.0009765625, %v478_v54  ;;  %v639_v20 = vsel %vm638_vm10, %v637_v52, %v632_v53 }
  0xfd   : > { %v644_v23 = vrot.slane %v526_v10, %v643_v18 }
  0xff   : > { %v487_v60 = vpop.xlane.xlu0 %486  ;;  %v646_v44 = vsel %vm645_vm11, %v644_v23, %v639_v20 }
 0x100   : > { %v527_v34 = vmul.f32 0.0009765625, %v487_v60  ;;  %v747_v60 = vld [vmem:[%s2570_s3] sm:$0xff] }
 0x101   : > { %1306 = vmatpush3.msra.mxu1 %v747_v60  ;;  %v2763_v60 = vld [vmem:[#allocation16_spill] sm:$0xff] }
 0x102   : > { %v651_v56 = vrot.slane %v527_v34, %v650_v61 }
 0x103   : > { %v496_v29 = vpop.xlane.xlu1 %495 }
 0x104   : > { %v528_v35 = vmul.f32 0.0009765625, %v496_v29  ;;  %v653_v6 = vsel %vm652_vm12, %v651_v56, %v646_v44 }
 0x105   : > { %v505_v3 = vpop.xlane.xlu0 %504 }
 0x106   : > { %v658_v16 = vrot.slane %v528_v35, %v657_v38  ;;  %v529_v54 = vmul.f32 0.0009765625, %v505_v3  ;;  %v748_v38 = vld [vmem:[%s2571_s4] sm:$0x1]  ;;  %v826_v35 = vsub.s32 0, %v2213_v46 }
 0x108   : > { %v665_v18 = vrot.slane %v529_v54, %v664_v48  ;;  %v660_v10 = vsel %vm659_vm13, %v658_v16, %v653_v6 }
 0x109   : > { %v514_v50 = vpop.xlane.xlu1 %513 }
 0x10a   : > { %v530_v52 = vmul.f32 0.0009765625, %v514_v50  ;;  %v667_v24 = vsel %vm666_vm14, %v665_v18, %v660_v10 }
 0x10c   : > { %v672_v61 = vrot.slane %v530_v52, %v671_v49 }
 0x10e   : > { %v674_v58 = vsel %vm673_vm15, %v672_v61, %v667_v24 }
 0x10f   : > { %1303 = vmatmul.mubr.f32.vlgmr.msra.gmra.mrb[0].mxu0 %v674_v58  ;;  %v2762_v58 = vld [vmem:[#allocation11_spill] sm:$0xff] }
 0x1e2   : > { %v742_v53 = vpop.f32.mrb[0].mxu0 }
 0x1e3   : > { %v743_v23 = vadd.f32 %v742_v53, %v547_v59  ;;  %v1304_v34 = vpop.f32.mrb[1].mxu0  ;;  %v2765_v59 = vld [vmem:[#allocation14_spill] sm:$0xff] }
 0x1e4   : > { %v2767_v34 = vld [vmem:[#allocation18_spill] sm:$0xff] }
 0x1e5   : > { %v746_v20 = vmax.f32 %v743_v23, 0.0  ;;  %v2766_v23 = vld [vmem:[#allocation15_spill] sm:$0xff] }
 0x1e7   : > { %1308 = vmatmul.mubr.msk.f32.vlgmr.msra.gmra.mrb[0].mxu1 %vm749_vm0, %v746_v20  ;;  %v2768_v20 = vld [vmem:[#allocation24_spill] sm:$0xff] }
 0x2ba   : > { %v819_v56 = vpop.f32.mrb[0].mxu1 }
 0x2bb   : > { %v820_v29 = vadd.f32 %v819_v56, %v748_v38  ;;  %v1309_v11 = vpop.f32.mrb[1].mxu1  ;;  %v2769_v56 = vld [vmem:[#allocation29_spill] sm:$0xff] }
 0x2bc   : > { %v2770_v11 = vld [vmem:[#allocation31_spill] sm:$0xff] }
 0x2bd   : > { %1387 = vtanh.f32 %v820_v29 }
 0x2c7   : > { %v1388_v48 = vpop.eup %1387 }
 0x2c8   : > { %v827_v44 = vrot.slane %v1388_v48, %v826_v35  ;;  %v2771_v48 = vld [vmem:[#allocation37_spill] sm:$0xff] }
 0x2ca   : > { %833 = vbcast.lane.b32.xlu1 %v827_v44, 264  ;;  %829 = vbcast.lane.b32.xlu0 %v827_v44, 256 }
 0x2ce   : > { %837 = vbcast.lane.b32.xlu1 %v827_v44, 272  ;;  %845 = vbcast.lane.b32.xlu0 %v827_v44, 288 }
 0x2d2   : > { %841 = vbcast.lane.b32.xlu1 %v827_v44, 280  ;;  %853 = vbcast.lane.b32.xlu0 %v827_v44, 304 }
 0x2d6   : > { %849 = vbcast.lane.b32.xlu1 %v827_v44, 296  ;;  %861 = vbcast.lane.b32.xlu0 %v827_v44, 320 }
 0x2da   : > { %857 = vbcast.lane.b32.xlu1 %v827_v44, 312  ;;  %869 = vbcast.lane.b32.xlu0 %v827_v44, 336 }
 0x2de   : > { %865 = vbcast.lane.b32.xlu1 %v827_v44, 328  ;;  %877 = vbcast.lane.b32.xlu0 %v827_v44, 352 }
 0x2e2   : > { %873 = vbcast.lane.b32.xlu1 %v827_v44, 344  ;;  %885 = vbcast.lane.b32.xlu0 %v827_v44, 368 }
 0x2e6   : > { %881 = vbcast.lane.b32.xlu1 %v827_v44, 360 }
 0x2ea   : > { %889 = vbcast.lane.b32.xlu1 %v827_v44, 376 }
 0x33c   : > { %v834_v46 = vpop.permute.xlu1 %833  ;;  %v830_v3 = vpop.permute.xlu0 %829 }
 0x33d   : > { %v899_v6 = vmul.f32 %v834_v46, %v1676_v13  ;;  %v900_v16 = vmul.f32 %v834_v46, %v1679_v14  ;;  %v901_v54 = vmul.f32 %v834_v46, %v1686_v17  ;;  %v902_v49 = vmul.f32 %v834_v46, %v1698_v22 }
 0x33e   : > { %v903_v18 = vmul.f32 %v834_v46, %v1719_v31  ;;  %v904_v50 = vmul.f32 %v834_v46, %v1736_v39  ;;  %v905_v52 = vmul.f32 %v834_v46, %v1750_v45  ;;  %v906_v10 = vmul.f32 %v834_v46, %v1771_v55 }
 0x33f   : > { %1027 = vst [vmem:[%s2266_s13 + $0x40] sm:$0xff] %v899_v6  ;;  %1028 = vst [vmem:[%s2266_s13 + $0x48] sm:$0xff] %v900_v16  ;;  %v891_v13 = vmul.f32 %v830_v3, %v1643_v0  ;;  %v892_v14 = vmul.f32 %v830_v3, %v1646_v1  ;;  %v893_v17 = vmul.f32 %v830_v3, %v1649_v2  ;;  %v2772_v6 = vld [vmem:[#allocation8_spill] sm:$0xff] }
 0x340   : > { %1029 = vst [vmem:[%s2266_s13 + $0x50] sm:$0xff] %v901_v54  ;;  %1030 = vst [vmem:[%s2266_s13 + $0x58] sm:$0xff] %v902_v49  ;;  %v894_v22 = vmul.f32 %v830_v3, %v1654_v4  ;;  %v895_v31 = vmul.f32 %v830_v3, %v1667_v9  ;;  %v896_v39 = vmul.f32 %v830_v3, %v1682_v15  ;;  %v838_v45 = vpop.permute.xlu1 %837  ;;  %v846_v2 = vpop.permute.xlu0 %845  ;;  %v2773_v54 = vld [vmem:[#allocation9_spill] sm:$0xff] }
 0x341   : > { %1031 = vst [vmem:[%s2266_s13 + $0x60] sm:$0xff] %v903_v18  ;;  %1032 = vst [vmem:[%s2266_s13 + $0x68] sm:$0xff] %v904_v50  ;;  %v897_v0 = vmul.f32 %v830_v3, %v1691_v19  ;;  %v898_v1 = vmul.f32 %v830_v3, %v1712_v28  ;;  %v907_v4 = vmul.f32 %v838_v45, %v1657_v5  ;;  %v2774_v18 = vld [vmem:[#allocation10_spill] sm:$0xff] }
 0x342   : > { %1033 = vst [vmem:[%s2266_s13 + $0x70] sm:$0xff] %v905_v52  ;;  %1034 = vst [vmem:[%s2266_s13 + $0x78] sm:$0xff] %v906_v10  ;;  %v908_v9 = vmul.f32 %v838_v45, %v1661_v7  ;;  %v909_v15 = vmul.f32 %v838_v45, %v1664_v8  ;;  %v910_v19 = vmul.f32 %v838_v45, %v1673_v12  ;;  %v2775_v52 = vld [vmem:[#allocation12_spill] sm:$0xff] }
 0x343   : > { %1019 = vst [vmem:[%s2266_s13] sm:$0xff] %v891_v13  ;;  %1020 = vst [vmem:[%s2266_s13 + $0x8] sm:$0xff] %v892_v14  ;;  %v911_v28 = vmul.f32 %v838_v45, %v1695_v21  ;;  %v912_v55 = vmul.f32 %v838_v45, %v1716_v30  ;;  %v913_v5 = vmul.f32 %v838_v45, %v1724_v33  ;;  %v2776_v13 = vld [vmem:[#allocation17_spill] sm:$0xff] }
 0x344   : > { %1021 = vst [vmem:[%s2266_s13 + $0x10] sm:$0xff] %v893_v17  ;;  %1022 = vst [vmem:[%s2266_s13 + $0x18] sm:$0xff] %v894_v22  ;;  %v914_v7 = vmul.f32 %v838_v45, %v1746_v43  ;;  %v923_v8 = vmul.f32 %v846_v2, %v1732_v37  ;;  %v924_v12 = vmul.f32 %v846_v2, %v1740_v41  ;;  %v842_v24 = vpop.permute.xlu1 %841  ;;  %v2777_v17 = vld [vmem:[#allocation20_spill] sm:$0xff]  ;;  %v2780_v45 = vld [vmem:[#allocation26_spill] sm:$0xff] }
 0x345   : > { %1023 = vst [vmem:[%s2266_s13 + $0x20] sm:$0xff] %v895_v31  ;;  %1024 = vst [vmem:[%s2266_s13 + $0x28] sm:$0xff] %v896_v39  ;;  %v925_v21 = vmul.f32 %v846_v2, %v1743_v42  ;;  %v926_v30 = vmul.f32 %v846_v2, %v1761_v51  ;;  %v927_v33 = vmul.f32 %v846_v2, %v1788_v63  ;;  %v854_v42 = vpop.permute.xlu0 %853  ;;  %v2778_v31 = vld [vmem:[#allocation23_spill] sm:$0xff] }
 0x346   : > { %1025 = vst [vmem:[%s2266_s13 + $0x30] sm:$0xff] %v897_v0  ;;  %1026 = vst [vmem:[%s2266_s13 + $0x38] sm:$0xff] %v898_v1  ;;  %v928_v43 = vmul.f32 %v846_v2, %v1811_v32  ;;  %v929_v37 = vmul.f32 %v846_v2, %v1820_v40  ;;  %v930_v41 = vmul.f32 %v846_v2, %v1842_v62  ;;  %v2779_v0 = vld [vmem:[#allocation28_spill] sm:$0xff] }
 0x347   : > { %1035 = vst [vmem:[%s2266_s13 + $0x80] sm:$0xff] %v907_v4  ;;  %1036 = vst [vmem:[%s2266_s13 + $0x88] sm:$0xff] %v908_v9  ;;  %v915_v51 = vmul.f32 %v842_v24, %v1703_v25  ;;  %v916_v63 = vmul.f32 %v842_v24, %v1706_v26  ;;  %v917_v32 = vmul.f32 %v842_v24, %v1709_v27  ;;  %v2764_v27 = vld [vmem:[#allocation13_spill] sm:$0xff]  ;;  %v2781_v4 = vld [vmem:[#allocation27_spill] sm:$0xff] }
 0x348   : > { %1037 = vst [vmem:[%s2266_s13 + $0x90] sm:$0xff] %v909_v15  ;;  %1038 = vst [vmem:[%s2266_s13 + $0x98] sm:$0xff] %v910_v19  ;;  %v918_v40 = vmul.f32 %v842_v24, %v1729_v36  ;;  %v919_v62 = vmul.f32 %v842_v24, %v1754_v47  ;;  %v920_v61 = vmul.f32 %v842_v24, %v1775_v57  ;;  %v850_v46 = vpop.permute.xlu1 %849  ;;  %v2782_v15 = vld [vmem:[#allocation30_spill] sm:$0xff] }
 0x349   : > { %1039 = vst [vmem:[%s2266_s13 + $0xa0] sm:$0xff] %v911_v28  ;;  %1040 = vst [vmem:[%s2266_s13 + $0xa8] sm:$0xff] %v912_v55  ;;  %v921_v25 = vmul.f32 %v842_v24, %v2762_v58  ;;  %v922_v26 = vmul.f32 %v842_v24, %v2763_v60  ;;  %v939_v36 = vmul.f32 %v854_v42, %v2764_v27  ;;  %v862_v3 = vpop.permute.xlu0 %861  ;;  %v2783_v28 = vld [vmem:[#allocation33_spill] sm:$0xff]  ;;  %v2788_v24 = vld [vmem:[#allocation19_spill] sm:$0xff] }
 0x34a   : > { %1041 = vst [vmem:[%s2266_s13 + $0xb0] sm:$0xff] %v913_v5  ;;  %1042 = vst [vmem:[%s2266_s13 + $0xb8] sm:$0xff] %v914_v7  ;;  %v940_v53 = vmul.f32 %v854_v42, %v2765_v59  ;;  %v941_v47 = vmul.f32 %v854_v42, %v2766_v23  ;;  %v942_v57 = vmul.f32 %v854_v42, %v2767_v34  ;;  %v2784_v5 = vld [vmem:[#allocation39_spill] sm:$0xff]  ;;  %v2792_v58 = vld [vmem:[#allocation32_spill] sm:$0xff] }
 0x34b   : > { %1051 = vst [vmem:[%s2266_s13 + $0x100] sm:$0xff] %v923_v8  ;;  %1052 = vst [vmem:[%s2266_s13 + $0x108] sm:$0xff] %v924_v12  ;;  %v943_v38 = vmul.f32 %v854_v42, %v2768_v20  ;;  %v944_v29 = vmul.f32 %v854_v42, %v2769_v56  ;;  %v945_v35 = vmul.f32 %v854_v42, %v2770_v11  ;;  %v2785_v8 = vld [vmem:[#allocation43_spill] sm:$0xff]  ;;  %v2793_v60 = vld [vmem:[#allocation38_spill] sm:$0xff] }
 0x34c   : > { %1053 = vst [vmem:[%s2266_s13 + $0x110] sm:$0xff] %v925_v21  ;;  %1054 = vst [vmem:[%s2266_s13 + $0x118] sm:$0xff] %v926_v30  ;;  %v946_v44 = vmul.f32 %v854_v42, %v2771_v48  ;;  %v931_v16 = vmul.f32 %v850_v46, %v2772_v6  ;;  %v932_v49 = vmul.f32 %v850_v46, %v2773_v54  ;;  %v2786_v21 = vld [vmem:[#allocation47_spill] sm:$0xff]  ;;  %v2794_v27 = vld [vmem:[#allocation40_spill] sm:$0xff] }
 0x34d   : > { %1055 = vst [vmem:[%s2266_s13 + $0x120] sm:$0xff] %v927_v33  ;;  %1056 = vst [vmem:[%s2266_s13 + $0x128] sm:$0xff] %v928_v43  ;;  %v933_v50 = vmul.f32 %v850_v46, %v2774_v18  ;;  %v934_v10 = vmul.f32 %v850_v46, %v2775_v52  ;;  %v935_v14 = vmul.f32 %v850_v46, %v2776_v13  ;;  %v2787_v33 = vld [vmem:[#allocation52_spill] sm:$0xff]  ;;  %v2795_v59 = vld [vmem:[#allocation46_spill] sm:$0xff] }
 0x34e   : > { %1057 = vst [vmem:[%s2266_s13 + $0x130] sm:$0xff] %v929_v37  ;;  %1058 = vst [vmem:[%s2266_s13 + $0x138] sm:$0xff] %v930_v41  ;;  %v936_v22 = vmul.f32 %v850_v46, %v2777_v17  ;;  %v937_v39 = vmul.f32 %v850_v46, %v2778_v31  ;;  %v938_v1 = vmul.f32 %v850_v46, %v2779_v0  ;;  %v858_v37 = vpop.permute.xlu1 %857  ;;  %v870_v41 = vpop.permute.xlu0 %869  ;;  %v2796_v23 = vld [vmem:[#allocation42_spill] sm:$0xff]  ;;  %v2797_v34 = vld [vmem:[#allocation44_spill] sm:$0xff] }
 0x34f   : > { %1043 = vst [vmem:[%s2266_s13 + $0xc0] sm:$0xff] %v915_v51  ;;  %1044 = vst [vmem:[%s2266_s13 + $0xc8] sm:$0xff] %v916_v63  ;;  %v955_v2 = vmul.f32 %v862_v3, %v2780_v45  ;;  %v956_v9 = vmul.f32 %v862_v3, %v2781_v4  ;;  %v957_v19 = vmul.f32 %v862_v3, %v2782_v15  ;;  %v2789_v51 = vld [vmem:[#allocation21_spill] sm:$0xff]  ;;  %v2800_v11 = vld [vmem:[#allocation56_spill] sm:$0xff] }
 0x350   : > { %1045 = vst [vmem:[%s2266_s13 + $0xd0] sm:$0xff] %v917_v32  ;;  %1046 = vst [vmem:[%s2266_s13 + $0xd8] sm:$0xff] %v918_v40  ;;  %v958_v55 = vmul.f32 %v862_v3, %v2783_v28  ;;  %v959_v7 = vmul.f32 %v862_v3, %v2784_v5  ;;  %v960_v12 = vmul.f32 %v862_v3, %v2785_v8  ;;  %v2790_v32 = vld [vmem:[#allocation22_spill] sm:$0xff]  ;;  %v2798_v20 = vld [vmem:[#allocation45_spill] sm:$0xff] }
 0x351   : > { %1047 = vst [vmem:[%s2266_s13 + $0xe0] sm:$0xff] %v919_v62  ;;  %1048 = vst [vmem:[%s2266_s13 + $0xe8] sm:$0xff] %v920_v61  ;;  %v961_v30 = vmul.f32 %v862_v3, %v2786_v21  ;;  %v962_v43 = vmul.f32 %v862_v3, %v2787_v33  ;;  %v947_v42 = vmul.f32 %v858_v37, %v2788_v24  ;;  %v2791_v62 = vld [vmem:[#allocation25_spill] sm:$0xff]  ;;  %v2801_v48 = vld [vmem:[#allocation62_spill] sm:$0xff] }
 0x352   : > { %1049 = vst [vmem:[%s2266_s13 + $0xf0] sm:$0xff] %v921_v25  ;;  %1050 = vst [vmem:[%s2266_s13 + $0xf8] sm:$0xff] %v922_v26  ;;  %v948_v63 = vmul.f32 %v858_v37, %v2789_v51  ;;  %v949_v40 = vmul.f32 %v858_v37, %v2790_v32  ;;  %v950_v61 = vmul.f32 %v858_v37, %v2791_v62  ;;  %v2799_v56 = vld [vmem:[#allocation49_spill] sm:$0xff]  ;;  %v2802_v46 = vld [vmem:[#allocation64_spill] sm:$0xff]  ;;  %v866_v54 = vpop.permute.xlu1 %865 }
 0x353   : > { %1067 = vst [vmem:[%s2266_s13 + $0x180] sm:$0xff] %v939_v36  ;;  %1068 = vst [vmem:[%s2266_s13 + $0x188] sm:$0xff] %v940_v53  ;;  %v951_v25 = vmul.f32 %v858_v37, %v2792_v58  ;;  %v952_v26 = vmul.f32 %v858_v37, %v2793_v60  ;;  %v953_v36 = vmul.f32 %v858_v37, %v2794_v27  ;;  %v2803_v6 = vld [vmem:[#allocation70_spill] sm:$0xff]  ;;  %v2805_v52 = vld [vmem:[#allocation35_spill] sm:$0xff] }
 0x354   : > { %1069 = vst [vmem:[%s2266_s13 + $0x190] sm:$0xff] %v941_v47  ;;  %1070 = vst [vmem:[%s2266_s13 + $0x198] sm:$0xff] %v942_v57  ;;  %v954_v53 = vmul.f32 %v858_v37, %v2795_v59  ;;  %v971_v47 = vmul.f32 %v870_v41, %v2796_v23  ;;  %v972_v57 = vmul.f32 %v870_v41, %v2797_v34  ;;  %v2804_v18 = vld [vmem:[#allocation34_spill] sm:$0xff]  ;;  %v2806_v13 = vld [vmem:[#allocation36_spill] sm:$0xff] }
 0x355   : > { %1071 = vst [vmem:[%s2266_s13 + $0x1a0] sm:$0xff] %v943_v38  ;;  %1072 = vst [vmem:[%s2266_s13 + $0x1a8] sm:$0xff] %v944_v29  ;;  %v973_v38 = vmul.f32 %v870_v41, %v2798_v20  ;;  %v974_v29 = vmul.f32 %v870_v41, %v2799_v56  ;;  %v977_v3 = vmul.f32 %v870_v41, %v2802_v46  ;;  %v2807_v17 = vld [vmem:[#allocation41_spill] sm:$0xff]  ;;  %v2808_v31 = vld [vmem:[#allocation48_spill] sm:$0xff] }
 0x356   : > { %1073 = vst [vmem:[%s2266_s13 + $0x1b0] sm:$0xff] %v945_v35  ;;  %1074 = vst [vmem:[%s2266_s13 + $0x1b8] sm:$0xff] %v946_v44  ;;  %v975_v35 = vmul.f32 %v870_v41, %v2800_v11  ;;  %v976_v44 = vmul.f32 %v870_v41, %v2801_v48  ;;  %v2809_v0 = vld [vmem:[#allocation53_spill] sm:$0xff]  ;;  %v2810_v45 = vld [vmem:[#allocation55_spill] sm:$0xff]  ;;  %v874_v51 = vpop.permute.xlu1 %873 }
 0x357   : > { %1059 = vst [vmem:[%s2266_s13 + $0x140] sm:$0xff] %v931_v16  ;;  %1060 = vst [vmem:[%s2266_s13 + $0x148] sm:$0xff] %v932_v49  ;;  %v978_v16 = vmul.f32 %v870_v41, %v2803_v6  ;;  %v878_v49 = vpop.permute.xlu0 %877  ;;  %v2811_v4 = vld [vmem:[#allocation61_spill] sm:$0xff]  ;;  %v2812_v15 = vld [vmem:[#allocation58_spill] sm:$0xff] }
 0x358   : > { %1061 = vst [vmem:[%s2266_s13 + $0x150] sm:$0xff] %v933_v50  ;;  %1062 = vst [vmem:[%s2266_s13 + $0x158] sm:$0xff] %v934_v10  ;;  %v963_v50 = vmul.f32 %v866_v54, %v2804_v18  ;;  %v964_v10 = vmul.f32 %v866_v54, %v2805_v52  ;;  %v2813_v28 = vld [vmem:[#allocation59_spill] sm:$0xff]  ;;  %v2814_v5 = vld [vmem:[#allocation60_spill] sm:$0xff] }
 0x359   : > { %1063 = vst [vmem:[%s2266_s13 + $0x160] sm:$0xff] %v935_v14  ;;  %1064 = vst [vmem:[%s2266_s13 + $0x168] sm:$0xff] %v936_v22  ;;  %v965_v14 = vmul.f32 %v866_v54, %v2806_v13  ;;  %v966_v22 = vmul.f32 %v866_v54, %v2807_v17  ;;  %v2815_v8 = vld [vmem:[#allocation65_spill] sm:$0xff]  ;;  %v2816_v21 = vld [vmem:[#allocation72_spill] sm:$0xff] }
 0x35a   : > { %1065 = vst [vmem:[%s2266_s13 + $0x170] sm:$0xff] %v937_v39  ;;  %1066 = vst [vmem:[%s2266_s13 + $0x178] sm:$0xff] %v938_v1  ;;  %v967_v39 = vmul.f32 %v866_v54, %v2808_v31  ;;  %v968_v1 = vmul.f32 %v866_v54, %v2809_v0  ;;  %v2817_v33 = vld [vmem:[#allocation77_spill] sm:$0xff]  ;;  %v2818_v37 = vld [vmem:[#allocation79_spill] sm:$0xff]  ;;  %v882_v52 = vpop.permute.xlu1 %881 }
 0x35b   : > { %1083 = vst [vmem:[%s2266_s13 + $0x200] sm:$0xff] %v955_v2  ;;  %1084 = vst [vmem:[%s2266_s13 + $0x208] sm:$0xff] %v956_v9  ;;  %v969_v2 = vmul.f32 %v866_v54, %v2810_v45  ;;  %v970_v9 = vmul.f32 %v866_v54, %v2811_v4  ;;  %v993_v41 = vmul.f32 %v878_v49, %v2818_v37  ;;  %v2819_v24 = vld [vmem:[#allocation82_spill] sm:$0xff]  ;;  %v2821_v62 = vld [vmem:[#allocation51_spill] sm:$0xff] }
 0x35c   : > { %1085 = vst [vmem:[%s2266_s13 + $0x210] sm:$0xff] %v957_v19  ;;  %1086 = vst [vmem:[%s2266_s13 + $0x218] sm:$0xff] %v958_v55  ;;  %v987_v19 = vmul.f32 %v878_v49, %v2812_v15  ;;  %v988_v55 = vmul.f32 %v878_v49, %v2813_v28  ;;  %v2820_v32 = vld [vmem:[#allocation50_spill] sm:$0xff]  ;;  %v2823_v60 = vld [vmem:[#allocation57_spill] sm:$0xff] }
 0x35d   : > { %1087 = vst [vmem:[%s2266_s13 + $0x220] sm:$0xff] %v959_v7  ;;  %1088 = vst [vmem:[%s2266_s13 + $0x228] sm:$0xff] %v960_v12  ;;  %v989_v7 = vmul.f32 %v878_v49, %v2814_v5  ;;  %v990_v12 = vmul.f32 %v878_v49, %v2815_v8  ;;  %v2822_v58 = vld [vmem:[#allocation54_spill] sm:$0xff]  ;;  %v2824_v27 = vld [vmem:[#allocation63_spill] sm:$0xff] }
 0x35e   : > { %1089 = vst [vmem:[%s2266_s13 + $0x230] sm:$0xff] %v961_v30  ;;  %1090 = vst [vmem:[%s2266_s13 + $0x238] sm:$0xff] %v962_v43  ;;  %v991_v30 = vmul.f32 %v878_v49, %v2816_v21  ;;  %v992_v43 = vmul.f32 %v878_v49, %v2817_v33  ;;  %v2825_v59 = vld [vmem:[#allocation67_spill] sm:$0xff]  ;;  %v2827_v34 = vld [vmem:[#allocation76_spill] sm:$0xff] }
 0x35f   : > { %1075 = vst [vmem:[%s2266_s13 + $0x1c0] sm:$0xff] %v947_v42  ;;  %1076 = vst [vmem:[%s2266_s13 + $0x1c8] sm:$0xff] %v948_v63  ;;  %v994_v42 = vmul.f32 %v878_v49, %v2819_v24  ;;  %v886_v63 = vpop.permute.xlu0 %885  ;;  %v2826_v23 = vld [vmem:[#allocation71_spill] sm:$0xff]  ;;  %v2828_v20 = vld [vmem:[#allocation74_spill] sm:$0xff] }
 0x360   : > { %1077 = vst [vmem:[%s2266_s13 + $0x1d0] sm:$0xff] %v949_v40  ;;  %1078 = vst [vmem:[%s2266_s13 + $0x1d8] sm:$0xff] %v950_v61  ;;  %v979_v40 = vmul.f32 %v874_v51, %v2820_v32  ;;  %v980_v61 = vmul.f32 %v874_v51, %v2821_v62  ;;  %v2829_v56 = vld [vmem:[#allocation75_spill] sm:$0xff]  ;;  %v2830_v11 = vld [vmem:[#allocation78_spill] sm:$0xff] }
 0x361   : > { %1079 = vst [vmem:[%s2266_s13 + $0x1e0] sm:$0xff] %v951_v25  ;;  %1080 = vst [vmem:[%s2266_s13 + $0x1e8] sm:$0xff] %v952_v26  ;;  %v981_v25 = vmul.f32 %v874_v51, %v2822_v58  ;;  %v982_v26 = vmul.f32 %v874_v51, %v2823_v60  ;;  %v2831_v48 = vld [vmem:[#allocation81_spill] sm:$0xff]  ;;  %v2832_v46 = vld [vmem:[#allocation88_spill] sm:$0xff] }
 0x362   : > { %1081 = vst [vmem:[%s2266_s13 + $0x1f0] sm:$0xff] %v953_v36  ;;  %1082 = vst [vmem:[%s2266_s13 + $0x1f8] sm:$0xff] %v954_v53  ;;  %v983_v36 = vmul.f32 %v874_v51, %v2824_v27  ;;  %v984_v53 = vmul.f32 %v874_v51, %v2825_v59  ;;  %v2833_v6 = vld [vmem:[#allocation89_spill] sm:$0xff]  ;;  %v2835_v18 = vld [vmem:[#allocation95_spill] sm:$0xff] }
 0x363   : > { %1099 = vst [vmem:[%s2266_s13 + $0x280] sm:$0xff] %v971_v47  ;;  %1100 = vst [vmem:[%s2266_s13 + $0x288] sm:$0xff] %v972_v57  ;;  %v985_v47 = vmul.f32 %v874_v51, %v2826_v23  ;;  %v986_v57 = vmul.f32 %v874_v51, %v2827_v34  ;;  %v2834_v54 = vld [vmem:[#allocation93_spill] sm:$0xff]  ;;  %v2844_v5 = vld [vmem:[#allocation83_spill] sm:$0xff] }
 0x364   : > { %1101 = vst [vmem:[%s2266_s13 + $0x290] sm:$0xff] %v973_v38  ;;  %1102 = vst [vmem:[%s2266_s13 + $0x298] sm:$0xff] %v974_v29  ;;  %v1003_v38 = vmul.f32 %v886_v63, %v2828_v20  ;;  %v1004_v29 = vmul.f32 %v886_v63, %v2829_v56  ;;  %v1009_v49 = vmul.f32 %v886_v63, %v2834_v54  ;;  %v2845_v8 = vld [vmem:[#allocation84_spill] sm:$0xff]  ;;  %v2846_v21 = vld [vmem:[#allocation85_spill] sm:$0xff] }
 0x365   : > { %1103 = vst [vmem:[%s2266_s13 + $0x2a0] sm:$0xff] %v975_v35  ;;  %1104 = vst [vmem:[%s2266_s13 + $0x2a8] sm:$0xff] %v976_v44  ;;  %v1005_v35 = vmul.f32 %v886_v63, %v2830_v11  ;;  %v1006_v44 = vmul.f32 %v886_v63, %v2831_v48  ;;  %v2847_v33 = vld [vmem:[#allocation90_spill] sm:$0xff]  ;;  %v2848_v37 = vld [vmem:[#allocation91_spill] sm:$0xff] }
 0x366   : > { %1105 = vst [vmem:[%s2266_s13 + $0x2b0] sm:$0xff] %v977_v3  ;;  %1106 = vst [vmem:[%s2266_s13 + $0x2b8] sm:$0xff] %v978_v16  ;;  %v1007_v3 = vmul.f32 %v886_v63, %v2832_v46  ;;  %v1008_v16 = vmul.f32 %v886_v63, %v2833_v6  ;;  %v2849_v24 = vld [vmem:[#allocation94_spill] sm:$0xff]  ;;  %v2850_v51 = vld [vmem:[#allocation96_spill] sm:$0xff] }
 0x367   : > { %1091 = vst [vmem:[%s2266_s13 + $0x240] sm:$0xff] %v963_v50  ;;  %1092 = vst [vmem:[%s2266_s13 + $0x248] sm:$0xff] %v964_v10  ;;  %v1010_v50 = vmul.f32 %v886_v63, %v2835_v18  ;;  %v2836_v10 = vld [vmem:[#allocation66_spill] sm:$0xff]  ;;  %v2851_v32 = vld [vmem:[#allocation97_spill] sm:$0xff] }
 0x368   : > { %1093 = vst [vmem:[%s2266_s13 + $0x250] sm:$0xff] %v965_v14  ;;  %1094 = vst [vmem:[%s2266_s13 + $0x258] sm:$0xff] %v966_v22  ;;  %v995_v13 = vmul.f32 %v882_v52, %v2836_v10  ;;  %v2837_v14 = vld [vmem:[#allocation68_spill] sm:$0xff]  ;;  %v2838_v22 = vld [vmem:[#allocation69_spill] sm:$0xff] }
 0x369   : > { %1095 = vst [vmem:[%s2266_s13 + $0x260] sm:$0xff] %v967_v39  ;;  %1096 = vst [vmem:[%s2266_s13 + $0x268] sm:$0xff] %v968_v1  ;;  %v996_v17 = vmul.f32 %v882_v52, %v2837_v14  ;;  %v997_v31 = vmul.f32 %v882_v52, %v2838_v22  ;;  %v2839_v39 = vld [vmem:[#allocation73_spill] sm:$0xff]  ;;  %v2840_v1 = vld [vmem:[#allocation80_spill] sm:$0xff] }
 0x36a   : > { %1097 = vst [vmem:[%s2266_s13 + $0x270] sm:$0xff] %v969_v2  ;;  %1098 = vst [vmem:[%s2266_s13 + $0x278] sm:$0xff] %v970_v9  ;;  %v998_v0 = vmul.f32 %v882_v52, %v2839_v39  ;;  %v999_v45 = vmul.f32 %v882_v52, %v2840_v1  ;;  %v2841_v2 = vld [vmem:[#allocation86_spill] sm:$0xff]  ;;  %v2842_v9 = vld [vmem:[#allocation87_spill] sm:$0xff] }
 0x36b   : > { %1115 = vst [vmem:[%s2266_s13 + $0x300] sm:$0xff] %v987_v19  ;;  %1116 = vst [vmem:[%s2266_s13 + $0x308] sm:$0xff] %v988_v55  ;;  %v1000_v4 = vmul.f32 %v882_v52, %v2841_v2  ;;  %v1001_v15 = vmul.f32 %v882_v52, %v2842_v9  ;;  %v2843_v19 = vld [vmem:[#allocation92_spill] sm:$0xff]  ;;  %v890_v55 = vpop.permute.xlu1 %889 }
 0x36c   : > { %1117 = vst [vmem:[%s2266_s13 + $0x310] sm:$0xff] %v989_v7  ;;  %1118 = vst [vmem:[%s2266_s13 + $0x318] sm:$0xff] %v990_v12  ;;  %v1002_v28 = vmul.f32 %v882_v52, %v2843_v19  ;;  %v1011_v7 = vmul.f32 %v890_v55, %v2844_v5  ;;  %v1012_v12 = vmul.f32 %v890_v55, %v2845_v8 }
 0x36d   : > { %1119 = vst [vmem:[%s2266_s13 + $0x320] sm:$0xff] %v991_v30  ;;  %1120 = vst [vmem:[%s2266_s13 + $0x328] sm:$0xff] %v992_v43  ;;  %v1013_v30 = vmul.f32 %v890_v55, %v2846_v21  ;;  %v1014_v43 = vmul.f32 %v890_v55, %v2847_v33  ;;  %v1017_v63 = vmul.f32 %v890_v55, %v2850_v51 }
 0x36e   : > { %1121 = vst [vmem:[%s2266_s13 + $0x330] sm:$0xff] %v993_v41  ;;  %1122 = vst [vmem:[%s2266_s13 + $0x338] sm:$0xff] %v994_v42  ;;  %v1015_v41 = vmul.f32 %v890_v55, %v2848_v37  ;;  %v1016_v42 = vmul.f32 %v890_v55, %v2849_v24 }
 0x36f   : > { %1107 = vst [vmem:[%s2266_s13 + $0x2c0] sm:$0xff] %v979_v40  ;;  %1108 = vst [vmem:[%s2266_s13 + $0x2c8] sm:$0xff] %v980_v61  ;;  %v1018_v40 = vmul.f32 %v890_v55, %v2851_v32 }
 0x370   : > { %1109 = vst [vmem:[%s2266_s13 + $0x2d0] sm:$0xff] %v981_v25  ;;  %1110 = vst [vmem:[%s2266_s13 + $0x2d8] sm:$0xff] %v982_v26 }
 0x371   : > { %1111 = vst [vmem:[%s2266_s13 + $0x2e0] sm:$0xff] %v983_v36  ;;  %1112 = vst [vmem:[%s2266_s13 + $0x2e8] sm:$0xff] %v984_v53 }
 0x372   : > { %1113 = vst [vmem:[%s2266_s13 + $0x2f0] sm:$0xff] %v985_v47  ;;  %1114 = vst [vmem:[%s2266_s13 + $0x2f8] sm:$0xff] %v986_v57 }
 0x373   : > { %1131 = vst [vmem:[%s2266_s13 + $0x380] sm:$0xff] %v1003_v38  ;;  %1132 = vst [vmem:[%s2266_s13 + $0x388] sm:$0xff] %v1004_v29 }
 0x374   : > { %1133 = vst [vmem:[%s2266_s13 + $0x390] sm:$0xff] %v1005_v35  ;;  %1134 = vst [vmem:[%s2266_s13 + $0x398] sm:$0xff] %v1006_v44 }
 0x375   : > { %1135 = vst [vmem:[%s2266_s13 + $0x3a0] sm:$0xff] %v1007_v3  ;;  %1136 = vst [vmem:[%s2266_s13 + $0x3a8] sm:$0xff] %v1008_v16 }
 0x376   : > { %1137 = vst [vmem:[%s2266_s13 + $0x3b0] sm:$0xff] %v1009_v49  ;;  %1138 = vst [vmem:[%s2266_s13 + $0x3b8] sm:$0xff] %v1010_v50 }
 0x377   : > { %1123 = vst [vmem:[%s2266_s13 + $0x340] sm:$0xff] %v995_v13  ;;  %1124 = vst [vmem:[%s2266_s13 + $0x348] sm:$0xff] %v996_v17 }
 0x378   : > { %1125 = vst [vmem:[%s2266_s13 + $0x350] sm:$0xff] %v997_v31  ;;  %1126 = vst [vmem:[%s2266_s13 + $0x358] sm:$0xff] %v998_v0 }
 0x379   : > { %1127 = vst [vmem:[%s2266_s13 + $0x360] sm:$0xff] %v999_v45  ;;  %1128 = vst [vmem:[%s2266_s13 + $0x368] sm:$0xff] %v1000_v4 }
 0x37a   : > { %1129 = vst [vmem:[%s2266_s13 + $0x370] sm:$0xff] %v1001_v15  ;;  %1130 = vst [vmem:[%s2266_s13 + $0x378] sm:$0xff] %v1002_v28 }
 0x37b   : > { %1139 = vst [vmem:[%s2266_s13 + $0x3c0] sm:$0xff] %v1011_v7  ;;  %1140 = vst [vmem:[%s2266_s13 + $0x3c8] sm:$0xff] %v1012_v12 }
 0x37c   : > { %1141 = vst [vmem:[%s2266_s13 + $0x3d0] sm:$0xff] %v1013_v30  ;;  %1142 = vst [vmem:[%s2266_s13 + $0x3d8] sm:$0xff] %v1014_v43 }
 0x37d   : > { %1143 = vst [vmem:[%s2266_s13 + $0x3e0] sm:$0xff] %v1015_v41  ;;  %1144 = vst [vmem:[%s2266_s13 + $0x3e8] sm:$0xff] %v1016_v42 }
 0x37e   : > { %1145 = vst [vmem:[%s2266_s13 + $0x3f0] sm:$0xff] %v1017_v63  ;;  %1146 = vst [vmem:[%s2266_s13 + $0x3f8] sm:$0xff] %v1018_v40 }
 0x37f   : > { %1432 = shalt.err (!%p1429_p2)
}
 0x380   : > { %s1433_s8 = scalar_lea.hbm %s2509_s29, 16384  ;;  %s1437_s10 = scalar_lea.hbm %s2572_s5, 32768 }
 0x381   : > { %p1434_p4 = scmp.ne.s32.totalorder %s2509_s29, %s1433_s8  ;;  %p1438_p9 = scmp.lt.u32.totalorder %s2509_s29, %s2572_s5 }
 0x382   : > { %p1439_p1 = scmp.lt.u32.totalorder %s1437_s10, %s1433_s8  ;;  %p1441_p6 = scmp.lt.u32.totalorder %s1433_s8, %s2509_s29 }
 0x383   : > { %p1435_p5 = pnand %p1434_p4, %p2852_p11 }
 0x384   : > { %p1440_p3 = por %p1439_p1, %p1438_p9 }
 0x385   : > { %p1436_p7 = pneg %p1435_p5 }
 0x386   : > { %p1442_p12 = por %p1441_p6, %p1440_p3 }
 0x388   : > { %p1443_p13 = pnand %p1442_p12, %p1436_p7 }
 0x38a   : > { %1446 = shalt.err (!%p1443_p13)
}
 0x38b   : > { %s1494_s25 = smov 1024   ;;  %s1495_s22 = smov 64  }
 0x38c   : > { %1336 = dma.vmem_to_hbm [thread:$0]  (%p2852_p11), %s2511_s17, 16384, %s2509_s29, %s1148_s12, %s1494_s25, %s1494_s25, %s1495_s22  }
 0x38d PF: > { %s1176_s26 = sand.u32 1, %s1473_s18   ;;  %p2853_p8 = scmp.ne.s32.totalorder %s2669_s6, 0 }
 0x38e   : > { %p2854_p10 = scmp.ge.s32.totalorder %s1485_s21, 2  ;;  %s1177_s14 = scalar_lea.sflag [#allocation4], %s1176_s26 }
 0x390   : > { %p1343_p0 = pnand %p2854_p10, %p2853_p8 }
 0x392   : > { %1468 = dma.done.wait (!%p1343_p0), %s1177_s14, 16384  }
 0x393   : > { %1470 = vsyncadd (!%p1343_p0), %s1177_s14, 4294950912  ;;  %p18_p2 = scmp.ge.s32.totalorder %s1551_s24, 4   ;;  %s2855_s18 = smov %s1477_s19 }
 0x394   : > { %s2856_s19 = smov %s1481_s20  ;;  %s2857_s20 = smov %s1563_s27 }
 0x395   : > { %s2858_s21 = smov %s1551_s24  ;;  %20 = sbr.rel (!%p18_p2) target bundleno = 5 (0x5), region = 85 }
 0x39c   :  { %1182 = vsyncpa [#allocation3], 1 }
 0x39d   :  { %1184 = vsyncpa [#allocation3 + $0x1], 1 }
 0x39e   :  { %1185 = vsyncpa [#allocation4], 1 }
 0x39f   :  { %1187 = vsyncpa [#allocation4 + $0x1], 1 }

</bundles_post_ra>
